<compile_context>
chip_gen: v6e
topology: v6e:2x2x1
jax: 0.10.0
libtpu: 0.0.40
codegen_flags: <defaults>
</compile_context>

<pallas_src>
import functools

import jax
import jax.numpy as jnp
import numpy as np
from jax import lax
from jax.experimental import pallas as pl
from jax.experimental.pallas import tpu as pltpu


def _round_up(x: int, m: int) -> int:
    return ((x + m - 1) // m) * m


# ----------------------------- Pallas kernel ------------------------------- #
def graph_encoder_kernel(offs_ref,                      # (G+1,) SMEM scalar prefetch
                         fw_src_ref, fw_dst_ref,        # (1, e_chunk) int32
                         bw_src_ref, bw_dst_ref,        # (1, e_chunk) int32
                         h_ref,                         # (Np, Dp) f32
                         w_h_ref, w_a_ref,              # (L, Dp, Dp) bf16
                         wm_h_ref, wm_a_ref,            # (Dp, Dp) bf16
                         bm_ref,                        # (1, Dp) f32
                         gh_ref, hout_ref,              # outputs (G, Dp), (Np, Dp)
                         *acc_refs,                     # (Np, Np) f32 scratch
                         bw_is_reverse: bool):
    a_fw_ref = acc_refs[0]
    a_bw_ref = None if bw_is_reverse else acc_refs[1]

    c = pl.program_id(0)
    last = pl.num_programs(0) - 1
    Np = h_ref.shape[0]
    L = w_h_ref.shape[0]
    G = gh_ref.shape[0]

    # shared (Np, 1) node-id iota; the == against a (1, Ec) edge row broadcasts
    node_ids = lax.broadcasted_iota(jnp.int32, (Np, 1), 0)

    @pl.when(c == 0)
    def _init():
        a_fw_ref[...] = jnp.zeros_like(a_fw_ref)
        if not bw_is_reverse:
            a_bw_ref[...] = jnp.zeros_like(a_bw_ref)

    # A[i, j] += #edges in this chunk with aggregation index i (edge_index[0])
    # and message index j (edge_index[1]); exact 0/1 bf16 one-hots on the MXU,
    # contracting over the lane (edge) axis of BOTH operands (trans_b form),
    # so no large relayout of either one-hot is required.
    def accumulate(src_ref, dst_ref, acc_ref):
        s_onehot = (src_ref[...] == node_ids).astype(jnp.bfloat16)   # (Np, Ec)
        d_onehot = (dst_ref[...] == node_ids).astype(jnp.bfloat16)   # (Np, Ec)
        acc_ref[...] += lax.dot_general(
            s_onehot, d_onehot,
            dimension_numbers=(((1,), (1,)), ((), ())),
            preferred_element_type=jnp.float32)

    accumulate(fw_src_ref, fw_dst_ref, a_fw_ref)
    if not bw_is_reverse:
        accumulate(bw_src_ref, bw_dst_ref, a_bw_ref)

    @pl.when(c == last)
    def _finalize():
        a_fw = a_fw_ref[...]                                   # exact f32 counts
        a_bw = a_fw.T if bw_is_reverse else a_bw_ref[...]      # reversed edges reuse
        deg_fw = jnp.sum(a_fw, axis=1, keepdims=True)
        deg_bw = jnp.sum(a_bw, axis=1, keepdims=True)
        inv_fw = 1.0 / jnp.maximum(deg_fw, 1.0)                # exact mean scale
        inv_bw = 1.0 / jnp.maximum(deg_bw, 1.0)
        a_fw_b = a_fw.astype(jnp.bfloat16)                     # small ints: exact
        a_bw_b = a_bw.astype(jnp.bfloat16)

        h0 = h_ref[...]
        h_fw = h0
        h_bw = h0
        for l in range(L):                                     # static layer loop
            w_h = w_h_ref[l]                                   # (Dp, Dp) bf16
            w_a = w_a_ref[l]
            aggr_fw = jnp.dot(a_fw_b, h_fw.astype(jnp.bfloat16),
                              preferred_element_type=jnp.float32) * inv_fw
            aggr_bw = jnp.dot(a_bw_b, h_bw.astype(jnp.bfloat16),
                              preferred_element_type=jnp.float32) * inv_bw
            h_fw = jnp.maximum(
                jnp.dot(h_fw.astype(jnp.bfloat16), w_h,
                        preferred_element_type=jnp.float32)
                + jnp.dot(aggr_fw.astype(jnp.bfloat16), w_a,
                          preferred_element_type=jnp.float32), 0.0)
            h_bw = jnp.maximum(
                jnp.dot(h_bw.astype(jnp.bfloat16), w_h,
                        preferred_element_type=jnp.float32)
                + jnp.dot(aggr_bw.astype(jnp.bfloat16), w_a,
                          preferred_element_type=jnp.float32), 0.0)

        # ln_edge_merge(cat(fw_h, bw_h)) without materializing the lane concat
        hout = (jnp.dot(h_fw.astype(jnp.bfloat16), wm_h_ref[...],
                        preferred_element_type=jnp.float32)
                + jnp.dot(h_bw.astype(jnp.bfloat16), wm_a_ref[...],
                          preferred_element_type=jnp.float32)
                + bm_ref[...])
        hout_ref[...] = hout

        # global_max_pool over sorted-batch segments [offs[g], offs[g+1])
        rows = []
        for g in range(G):                                     # static graph loop
            lo = offs_ref[g]
            hi = offs_ref[g + 1]
            in_seg = (node_ids >= lo) & (node_ids < hi)        # (Np, 1)
            rows.append(jnp.max(jnp.where(in_seg, hout, -jnp.inf),
                                axis=0, keepdims=True))
        gh_ref[...] = jnp.concatenate(rows, axis=0)            # one (G, Dp) store


# ------------------------------ host wrapper -------------------------------- #
def graph_encoder_forward(h, fw_edge_index, bw_edge_index, batch,
                          w_layers_t, wm_t, bm, num_graphs, *,
                          bw_is_reverse=False):
    """GraphEncoder forward.  `batch` must be sorted ascending (PyG convention)
    and node ids must be non-negative (padded edges use a -1 sentinel)."""
    N, D = h.shape
    L = w_layers_t.shape[0]
    E = fw_edge_index.shape[1]
    G = int(num_graphs)

    Dp = _round_up(max(D, 1), 128)          # lane-dense features & outputs
    Np = _round_up(max(N, 1), 16)           # sublane-aligned node rows

    # generation-aware VMEM capacity
    try:
        info = pltpu.get_tpu_info()
        vmem_cap = int(getattr(info, "vmem_capacity_bytes", 64 * 1024 * 1024))
    except Exception:
        vmem_cap = 64 * 1024 * 1024

    # edge-chunk size: multiple of 256 lanes (v6e/v7x MXU-friendly), capped so
    # the per-step bf16 one-hots stay inside a fixed budget
    dir_count = 1 if bw_is_reverse else 2
    onehot_budget = 8 * 1024 * 1024
    ec_cap = onehot_budget // max(1, 4 * dir_count * Np)
    e_chunk = max(256, min(4096, (ec_cap // 256) * 256))
    e_chunk = min(e_chunk, _round_up(max(E, 1), 256))
    e_pad = _round_up(max(E, 1), e_chunk)
    n_chunks = e_pad // e_chunk

    def pad_edges(edge_index):
        e = jnp.pad(edge_index.astype(jnp.int32), ((0, 0), (0, e_pad - E)),
                    constant_values=-1)        # -1 never matches a node id
        return e[0:1, :], e[1:2, :]            # lane-dense (1, E_pad) rows

    fw_src, fw_dst = pad_edges(fw_edge_index)
    bw_src, bw_dst = pad_edges(bw_edge_index)

    # sorted-batch segment offsets for the max pool (SMEM scalar prefetch)
    counts = jnp.zeros((G,), jnp.int32).at[batch.astype(jnp.int32)].add(1)
    offsets = jnp.concatenate(
        [jnp.zeros((1,), jnp.int32), jnp.cumsum(counts).astype(jnp.int32)])

    # lane-padded features & pre-split, pre-cast parameters
    h_p = jnp.pad(h.astype(jnp.float32), ((0, Np - N), (0, Dp - D)))
    pad2 = ((0, Dp - D), (0, Dp - D))
    w_h = jnp.pad(w_layers_t[:, :D, :], ((0, 0),) + pad2).astype(jnp.bfloat16)
    w_a = jnp.pad(w_layers_t[:, D:, :], ((0, 0),) + pad2).astype(jnp.bfloat16)
    wm_h = jnp.pad(wm_t[:D, :], pad2).astype(jnp.bfloat16)
    wm_a = jnp.pad(wm_t[D:, :], pad2).astype(jnp.bfloat16)
    bm_p = jnp.pad(bm.astype(jnp.float32), ((0, 0), (0, Dp - D)))

    # advisory cost estimate (padded shapes; MXU flops dominate)
    flops = (dir_count * 2 * Np * e_pad * Np          # adjacency build
             + L * 2 * 2 * Np * Np * Dp               # aggregation matmuls
             + L * 4 * 2 * Np * Dp * Dp               # per-layer linears
             + 2 * 2 * Np * Dp * Dp)                  # ln_edge_merge
    bytes_accessed = (4 * e_pad * 4 + Np * Dp * 4
                      + (2 * L + 2) * Dp * Dp * 2 + Dp * 4
                      + (G + Np) * Dp * 4 + (G + 1) * 4)
    cost = pl.CostEstimate(flops=int(flops), transcendentals=int(2 * Np),
                           bytes_accessed=int(bytes_accessed))

    # VMEM budget: scratch adjacencies + one-hots + features + params + I/O
    acc_bytes = (1 if bw_is_reverse else 2) * Np * Np * 4
    vmem_est = (acc_bytes
                + dir_count * 2 * Np * e_chunk * 2        # bf16 one-hots
                + 3 * Np * Np * 4                          # A values (f32 + bf16)
                + 12 * Np * Dp * 4                         # feature working set
                + 2 * ((2 * L + 2) * Dp * Dp * 2 + Dp * 4)
                + 2 * 4 * 8 * e_chunk * 4                  # double-buffered edges
                + 2 * (G + Np) * Dp * 4)
    vmem_limit = int(min(max(2 * vmem_est, 48 * 1024 * 1024),
                         int(0.85 * vmem_cap)))

    kernel = functools.partial(graph_encoder_kernel, bw_is_reverse=bw_is_reverse)

    scratch = [pltpu.VMEM((Np, Np), jnp.float32)]
    if not bw_is_reverse:
        scratch.append(pltpu.VMEM((Np, Np), jnp.float32))

    edge_spec = pl.BlockSpec((1, e_chunk), lambda c, offs: (0, c))
    grid_spec = pltpu.PrefetchScalarGridSpec(
        num_scalar_prefetch=1,
        grid=(n_chunks,),
        in_specs=[
            edge_spec, edge_spec, edge_spec, edge_spec,
            pl.BlockSpec((Np, Dp), lambda c, offs: (0, 0)),
            pl.BlockSpec((L, Dp, Dp), lambda c, offs: (0, 0, 0)),
            pl.BlockSpec((L, Dp, Dp), lambda c, offs: (0, 0, 0)),
            pl.BlockSpec((Dp, Dp), lambda c, offs: (0, 0)),
            pl.BlockSpec((Dp, Dp), lambda c, offs: (0, 0)),
            pl.BlockSpec((1, Dp), lambda c, offs: (0, 0)),
        ],
        out_specs=(
            pl.BlockSpec((G, Dp), lambda c, offs: (0, 0)),
            pl.BlockSpec((Np, Dp), lambda c, offs: (0, 0)),
        ),
        scratch_shapes=tuple(scratch),
    )

    out_shape = (
        jax.ShapeDtypeStruct((G, Dp), jnp.float32),    # g_h (lane-padded)
        jax.ShapeDtypeStruct((Np, Dp), jnp.float32),   # h   (lane-padded)
    )

    # TODO(synk): on v7x, shard the fw/bw direction stacks across the two
    # TensorCores (core_map / parallel grid axis) with a small merge pass.
    gh_p, hout_p = pl.pallas_call(
        kernel,
        out_shape=out_shape,
        grid_spec=grid_spec,
        compiler_params=pltpu.CompilerParams(
            dimension_semantics=("arbitrary",),
            vmem_limit_bytes=vmem_limit),
        cost_estimate=cost,
    )(offsets, fw_src, fw_dst, bw_src, bw_dst, h_p, w_h, w_a, wm_h, wm_a, bm_p)

    return gh_p[:, :D], hout_p[:N, :D]


# ---------------------------- pure-JAX reference ---------------------------- #
def ref_forward(h, fw_e, bw_e, batch, w_layers_t, wm_t, bm, num_graphs):
    def mpnn(h, edge):
        src, dst = edge[0], edge[1]
        E = edge.shape[1]
        for l in range(w_layers_t.shape[0]):
            msgs = h[dst]                                            # (E, D)
            summed = jax.ops.segment_sum(msgs, src, num_segments=h.shape[0])
            cnt = jax.ops.segment_sum(jnp.ones((E,), jnp.float32), src,
                                      num_segments=h.shape[0])
            aggr = summed / jnp.maximum(cnt, 1.0)[:, None]
            h = jax.nn.relu(jnp.concatenate([h, aggr], -1) @ w_layers_t[l])
        return h

    fw = mpnn(h, fw_e)
    bw = mpnn(h, bw_e)
    hout = jnp.concatenate([fw, bw], -1) @ wm_t + bm
    gh = jax.ops.segment_max(hout, batch, num_segments=num_graphs)
    return gh, hout


# --------------------------------- main ------------------------------------- #
if __name__ == "__main__":
    N, E, D, L, NUM_GRAPHS = 8, 16, 32, 2, 2

    key = jax.random.PRNGKey(0)
    k_h, k_e1, k_e2, k_e3, k_e4, k_wm, k_bm, *k_layers = jax.random.split(key, 7 + L)

    # node features
    h = jax.random.normal(k_h, (N, D), dtype=jnp.float32)

    # edges kept within each graph (nodes 0-3 -> graph 0, nodes 4-7 -> graph 1)
    fw_s = jnp.concatenate([jax.random.randint(k_e1, (E // 2,), 0, 4),
                            jax.random.randint(k_e2, (E // 2,), 4, 8)])
    fw_d = jnp.concatenate([jax.random.randint(k_e3, (E // 2,), 0, 4),
                            jax.random.randint(k_e4, (E // 2,), 4, 8)])
    fw_edge_index = jnp.stack([fw_s, fw_d]).astype(jnp.int32)     # (2, E)
    bw_edge_index = jnp.stack([fw_d, fw_s]).astype(jnp.int32)     # (2, E)

    batch = jnp.array([0, 0, 0, 0, 1, 1, 1, 1], dtype=jnp.int32)  # sorted (PyG)

    # deterministic xavier-normal parameters (torch Linear weight is (out, in))
    def xavier_normal(k, out_f, in_f):
        std = (2.0 / (in_f + out_f)) ** 0.5
        return std * jax.random.normal(k, (out_f, in_f), dtype=jnp.float32)

    # per-layer MPNN merge weights, stored pre-transposed: (L, 2D, D)
    w_layers_t = jnp.stack([xavier_normal(k_layers[l], D, 2 * D).T
                            for l in range(L)])
    # final ln_edge_merge: weight (D, 2D) -> transposed (2D, D), bias (1, D)
    wm_t = xavier_normal(k_wm, D, 2 * D).T
    bm = 0.01 * jax.random.normal(k_bm, (1, D), dtype=jnp.float32)

    g_ref, h_ref_out = ref_forward(h, fw_edge_index, bw_edge_index, batch,
                                   w_layers_t, wm_t, bm, NUM_GRAPHS)

    # bw edges here ARE the exact reverse of fw edges -> reuse A_bw = A_fw^T
    g_h, h_out = graph_encoder_forward(h, fw_edge_index, bw_edge_index, batch,
                                       w_layers_t, wm_t, bm, NUM_GRAPHS,
                                       bw_is_reverse=True)
    jax.block_until_ready((g_h, h_out))
    np.testing.assert_allclose(np.asarray(h_out), np.asarray(h_ref_out),
                               rtol=3e-2, atol=3e-2)
    np.testing.assert_allclose(np.asarray(g_h), np.asarray(g_ref),
                               rtol=3e-2, atol=3e-2)

    # general path (arbitrary bw_edge_index) for completeness
    g_h2, h_out2 = graph_encoder_forward(h, fw_edge_index, bw_edge_index, batch,
                                         w_layers_t, wm_t, bm, NUM_GRAPHS,
                                         bw_is_reverse=False)
    jax.block_until_ready((g_h2, h_out2))
    np.testing.assert_allclose(np.asarray(h_out2), np.asarray(h_ref_out),
                               rtol=3e-2, atol=3e-2)
    np.testing.assert_allclose(np.asarray(g_h2), np.asarray(g_ref),
                               rtol=3e-2, atol=3e-2)

    print("KERNEL_OK")
</pallas_src>

<mosaic_0001>
module attributes {stable_mosaic.version = 11 : i64} {
  func.func @graph_encoder_kernel(%arg0: i32, %arg1: memref<3xi32, #tpu.memory_space<smem>>, %arg2: memref<1x256xi32, #tpu.memory_space<vmem>>, %arg3: memref<1x256xi32, #tpu.memory_space<vmem>>, %arg4: memref<1x256xi32, #tpu.memory_space<vmem>>, %arg5: memref<1x256xi32, #tpu.memory_space<vmem>>, %arg6: memref<16x128xf32, #tpu.memory_space<vmem>>, %arg7: memref<2x128x128xbf16, #tpu.memory_space<vmem>>, %arg8: memref<2x128x128xbf16, #tpu.memory_space<vmem>>, %arg9: memref<128x128xbf16, #tpu.memory_space<vmem>>, %arg10: memref<128x128xbf16, #tpu.memory_space<vmem>>, %arg11: memref<1x128xf32, #tpu.memory_space<vmem>>, %arg12: memref<2x128xf32, #tpu.memory_space<vmem>>, %arg13: memref<16x128xf32, #tpu.memory_space<vmem>>, %arg14: memref<16x16xf32, #tpu.memory_space<vmem>>) attributes {dimension_semantics = [#tpu.dimension_semantics<arbitrary>], iteration_bounds = array<i64: 1>, scalar_prefetch = 1 : i64, scratch_operands = 1 : i64, tpu.core_type = #tpu.core_type<tc>, window_params = [{transform_indices = @transform_0, window_bounds = array<i64: 1, 256>}, {transform_indices = @transform_1, window_bounds = array<i64: 1, 256>}, {transform_indices = @transform_2, window_bounds = array<i64: 1, 256>}, {transform_indices = @transform_3, window_bounds = array<i64: 1, 256>}, {pipeline_mode = #tpu.pipeline_mode<synchronous>, transform_indices = @transform_4, window_bounds = array<i64: 16, 128>}, {pipeline_mode = #tpu.pipeline_mode<synchronous>, transform_indices = @transform_5, window_bounds = array<i64: 2, 128, 128>}, {pipeline_mode = #tpu.pipeline_mode<synchronous>, transform_indices = @transform_6, window_bounds = array<i64: 2, 128, 128>}, {pipeline_mode = #tpu.pipeline_mode<synchronous>, transform_indices = @transform_7, window_bounds = array<i64: 128, 128>}, {pipeline_mode = #tpu.pipeline_mode<synchronous>, transform_indices = @transform_8, window_bounds = array<i64: 128, 128>}, {pipeline_mode = #tpu.pipeline_mode<synchronous>, transform_indices = @transform_9, window_bounds = array<i64: 1, 128>}, {pipeline_mode = #tpu.pipeline_mode<synchronous>, transform_indices = @transform_10, window_bounds = array<i64: 2, 128>}, {pipeline_mode = #tpu.pipeline_mode<synchronous>, transform_indices = @transform_11, window_bounds = array<i64: 16, 128>}]} {
    %0 = tpu.iota {dimensions = array<i32: 0>} : vector<16x1xi32>
    %c0_i32 = arith.constant 0 : i32
    %1 = arith.cmpi eq, %arg0, %c0_i32 : i32
    %2 = arith.extui %1 : i1 to i32
    %c0_i32_0 = arith.constant 0 : i32
    %3 = arith.cmpi ne, %2, %c0_i32_0 : i32
    scf.if %3 {
      %cst_10 = arith.constant 0.000000e+00 : f32
      %25 = vector.broadcast %cst_10 : f32 to vector<16x16xf32>
      %c0_11 = arith.constant 0 : index
      %c0_12 = arith.constant 0 : index
      %26 = vector.load %arg14[%c0_11, %c0_12] : memref<16x16xf32, #tpu.memory_space<vmem>>, vector<16x16xf32>
      tpu.vector_store %arg14[%c0_11, %c0_12], %25 {strides = array<i32>} : memref<16x16xf32, #tpu.memory_space<vmem>>, vector<16x16xf32>,
    } else {
    }
    %c0 = arith.constant 0 : index
    %c0_1 = arith.constant 0 : index
    %4 = vector.load %arg2[%c0, %c0_1] : memref<1x256xi32, #tpu.memory_space<vmem>>, vector<1x256xi32>
    %5 = vector.broadcast %4 : vector<1x256xi32> to vector<16x256xi32>
    %6 = vector.broadcast %0 : vector<16x1xi32> to vector<16x256xi32>
    %7 = arith.cmpi eq, %5, %6 : vector<16x256xi32>
    %8 = arith.extui %7 : vector<16x256xi1> to vector<16x256xi32>
    %9 = arith.sitofp %8 : vector<16x256xi32> to vector<16x256xf32>
    %10 = arith.truncf %9 : vector<16x256xf32> to vector<16x256xbf16>
    %c0_2 = arith.constant 0 : index
    %c0_3 = arith.constant 0 : index
    %11 = vector.load %arg3[%c0_2, %c0_3] : memref<1x256xi32, #tpu.memory_space<vmem>>, vector<1x256xi32>
    %12 = vector.broadcast %11 : vector<1x256xi32> to vector<16x256xi32>
    %13 = vector.broadcast %0 : vector<16x1xi32> to vector<16x256xi32>
    %14 = arith.cmpi eq, %12, %13 : vector<16x256xi32>
    %15 = arith.extui %14 : vector<16x256xi1> to vector<16x256xi32>
    %16 = arith.sitofp %15 : vector<16x256xi32> to vector<16x256xf32>
    %17 = arith.truncf %16 : vector<16x256xf32> to vector<16x256xbf16>
    %c0_4 = arith.constant 0 : index
    %c0_5 = arith.constant 0 : index
    %18 = vector.load %arg14[%c0_4, %c0_5] : memref<16x16xf32, #tpu.memory_space<vmem>>, vector<16x16xf32>
    %cst = arith.constant dense<0.000000e+00> : vector<16x16xf32>
    %19 = tpu.matmul %10, %17, %cst {dimension_numbers = #tpu.dot_dimension_numbers<[1], [1], [0], [0], [0, 0, 1, 0], [], []>} : vector<16x256xbf16>, vector<16x256xbf16>, vector<16x16xf32> -> vector<16x16xf32>
    %20 = arith.addf %18, %19 : vector<16x16xf32>
    %c0_6 = arith.constant 0 : index
    %c0_7 = arith.constant 0 : index
    %21 = vector.load %arg14[%c0_6, %c0_7] : memref<16x16xf32, #tpu.memory_space<vmem>>, vector<16x16xf32>
    tpu.vector_store %arg14[%c0_6, %c0_7], %20 {strides = array<i32>} : memref<16x16xf32, #tpu.memory_space<vmem>>, vector<16x16xf32>,
    %c0_i32_8 = arith.constant 0 : i32
    %22 = arith.cmpi eq, %arg0, %c0_i32_8 : i32
    %23 = arith.extui %22 : i1 to i32
    %c0_i32_9 = arith.constant 0 : i32
    %24 = arith.cmpi ne, %23, %c0_i32_9 : i32
    scf.if %24 {
      %c0_10 = arith.constant 0 : index
      %c0_11 = arith.constant 0 : index
      %25 = vector.load %arg14[%c0_10, %c0_11] : memref<16x16xf32, #tpu.memory_space<vmem>>, vector<16x16xf32>
      %26 = tpu.transpose %25, [1, 0] : vector<16x16xf32> -> vector<16x16xf32>
      %cst_12 = arith.constant dense<0.000000e+00> : vector<16xf32>
      %27 = vector.multi_reduction <add>, %25, %cst_12 [1] : vector<16x16xf32> to vector<16xf32>
      %28 = vector.shape_cast %27 : vector<16xf32> to vector<16x1xf32>
      %cst_13 = arith.constant dense<0.000000e+00> : vector<16xf32>
      %29 = vector.multi_reduction <add>, %26, %cst_13 [1] : vector<16x16xf32> to vector<16xf32>
      %30 = vector.shape_cast %29 : vector<16xf32> to vector<16x1xf32>
      %cst_14 = arith.constant 1.000000e+00 : f32
      %31 = vector.broadcast %cst_14 : f32 to vector<16x1xf32>
      %32 = arith.maximumf %28, %31 : vector<16x1xf32>
      %cst_15 = arith.constant 1.000000e+00 : f32
      %33 = vector.broadcast %cst_15 : f32 to vector<16x1xf32>
      %34 = arith.divf %33, %32 : vector<16x1xf32>
      %cst_16 = arith.constant 1.000000e+00 : f32
      %35 = vector.broadcast %cst_16 : f32 to vector<16x1xf32>
      %36 = arith.maximumf %30, %35 : vector<16x1xf32>
      %cst_17 = arith.constant 1.000000e+00 : f32
      %37 = vector.broadcast %cst_17 : f32 to vector<16x1xf32>
      %38 = arith.divf %37, %36 : vector<16x1xf32>
      %39 = arith.truncf %25 : vector<16x16xf32> to vector<16x16xbf16>
      %40 = arith.truncf %26 : vector<16x16xf32> to vector<16x16xbf16>
      %c0_18 = arith.constant 0 : index
      %c0_19 = arith.constant 0 : index
      %41 = vector.load %arg6[%c0_18, %c0_19] : memref<16x128xf32, #tpu.memory_space<vmem>>, vector<16x128xf32>
      %c0_20 = arith.constant 0 : index
      %c0_21 = arith.constant 0 : index
      %c0_22 = arith.constant 0 : index
      %42 = vector.load %arg7[%c0_20, %c0_21, %c0_22] : memref<2x128x128xbf16, #tpu.memory_space<vmem>>, vector<1x128x128xbf16>
      %43 = vector.shape_cast %42 : vector<1x128x128xbf16> to vector<128x128xbf16>
      %c0_23 = arith.constant 0 : index
      %c0_24 = arith.constant 0 : index
      %c0_25 = arith.constant 0 : index
      %44 = vector.load %arg8[%c0_23, %c0_24, %c0_25] : memref<2x128x128xbf16, #tpu.memory_space<vmem>>, vector<1x128x128xbf16>
      %45 = vector.shape_cast %44 : vector<1x128x128xbf16> to vector<128x128xbf16>
      %46 = arith.truncf %41 : vector<16x128xf32> to vector<16x128xbf16>
      %cst_26 = arith.constant dense<0.000000e+00> : vector<16x128xf32>
      %47 = tpu.matmul %39, %46, %cst_26 {dimension_numbers = #tpu.dot_dimension_numbers<[1], [0], [0], [1], [0, 0, 1, 1], [], []>} : vector<16x16xbf16>, vector<16x128xbf16>, vector<16x128xf32> -> vector<16x128xf32>
      %48 = vector.broadcast %34 : vector<16x1xf32> to vector<16x128xf32>
      %49 = arith.mulf %47, %48 : vector<16x128xf32>
      %50 = arith.truncf %41 : vector<16x128xf32> to vector<16x128xbf16>
      %cst_27 = arith.constant dense<0.000000e+00> : vector<16x128xf32>
      %51 = tpu.matmul %40, %50, %cst_27 {dimension_numbers = #tpu.dot_dimension_numbers<[1], [0], [0], [1], [0, 0, 1, 1], [], []>} : vector<16x16xbf16>, vector<16x128xbf16>, vector<16x128xf32> -> vector<16x128xf32>
      %52 = vector.broadcast %38 : vector<16x1xf32> to vector<16x128xf32>
      %53 = arith.mulf %51, %52 : vector<16x128xf32>
      %54 = arith.truncf %41 : vector<16x128xf32> to vector<16x128xbf16>
      %cst_28 = arith.constant dense<0.000000e+00> : vector<16x128xf32>
      %55 = tpu.matmul %54, %43, %cst_28 {dimension_numbers = #tpu.dot_dimension_numbers<[1], [0], [0], [1], [0, 0, 1, 1], [], []>} : vector<16x128xbf16>, vector<128x128xbf16>, vector<16x128xf32> -> vector<16x128xf32>
      %56 = arith.truncf %49 : vector<16x128xf32> to vector<16x128xbf16>
      %cst_29 = arith.constant dense<0.000000e+00> : vector<16x128xf32>
      %57 = tpu.matmul %56, %45, %cst_29 {dimension_numbers = #tpu.dot_dimension_numbers<[1], [0], [0], [1], [0, 0, 1, 1], [], []>} : vector<16x128xbf16>, vector<128x128xbf16>, vector<16x128xf32> -> vector<16x128xf32>
      %58 = arith.addf %55, %57 : vector<16x128xf32>
      %cst_30 = arith.constant 0.000000e+00 : f32
      %59 = vector.broadcast %cst_30 : f32 to vector<16x128xf32>
      %60 = arith.maximumf %58, %59 : vector<16x128xf32>
      %61 = arith.truncf %41 : vector<16x128xf32> to vector<16x128xbf16>
      %cst_31 = arith.constant dense<0.000000e+00> : vector<16x128xf32>
      %62 = tpu.matmul %61, %43, %cst_31 {dimension_numbers = #tpu.dot_dimension_numbers<[1], [0], [0], [1], [0, 0, 1, 1], [], []>} : vector<16x128xbf16>, vector<128x128xbf16>, vector<16x128xf32> -> vector<16x128xf32>
      %63 = arith.truncf %53 : vector<16x128xf32> to vector<16x128xbf16>
      %cst_32 = arith.constant dense<0.000000e+00> : vector<16x128xf32>
      %64 = tpu.matmul %63, %45, %cst_32 {dimension_numbers = #tpu.dot_dimension_numbers<[1], [0], [0], [1], [0, 0, 1, 1], [], []>} : vector<16x128xbf16>, vector<128x128xbf16>, vector<16x128xf32> -> vector<16x128xf32>
      %65 = arith.addf %62, %64 : vector<16x128xf32>
      %cst_33 = arith.constant 0.000000e+00 : f32
      %66 = vector.broadcast %cst_33 : f32 to vector<16x128xf32>
      %67 = arith.maximumf %65, %66 : vector<16x128xf32>
      %c1 = arith.constant 1 : index
      %c0_34 = arith.constant 0 : index
      %c0_35 = arith.constant 0 : index
      %68 = vector.load %arg7[%c1, %c0_34, %c0_35] : memref<2x128x128xbf16, #tpu.memory_space<vmem>>, vector<1x128x128xbf16>
      %69 = vector.shape_cast %68 : vector<1x128x128xbf16> to vector<128x128xbf16>
      %c1_36 = arith.constant 1 : index
      %c0_37 = arith.constant 0 : index
      %c0_38 = arith.constant 0 : index
      %70 = vector.load %arg8[%c1_36, %c0_37, %c0_38] : memref<2x128x128xbf16, #tpu.memory_space<vmem>>, vector<1x128x128xbf16>
      %71 = vector.shape_cast %70 : vector<1x128x128xbf16> to vector<128x128xbf16>
      %72 = arith.truncf %60 : vector<16x128xf32> to vector<16x128xbf16>
      %cst_39 = arith.constant dense<0.000000e+00> : vector<16x128xf32>
      %73 = tpu.matmul %39, %72, %cst_39 {dimension_numbers = #tpu.dot_dimension_numbers<[1], [0], [0], [1], [0, 0, 1, 1], [], []>} : vector<16x16xbf16>, vector<16x128xbf16>, vector<16x128xf32> -> vector<16x128xf32>
      %74 = vector.broadcast %34 : vector<16x1xf32> to vector<16x128xf32>
      %75 = arith.mulf %73, %74 : vector<16x128xf32>
      %76 = arith.truncf %67 : vector<16x128xf32> to vector<16x128xbf16>
      %cst_40 = arith.constant dense<0.000000e+00> : vector<16x128xf32>
      %77 = tpu.matmul %40, %76, %cst_40 {dimension_numbers = #tpu.dot_dimension_numbers<[1], [0], [0], [1], [0, 0, 1, 1], [], []>} : vector<16x16xbf16>, vector<16x128xbf16>, vector<16x128xf32> -> vector<16x128xf32>
      %78 = vector.broadcast %38 : vector<16x1xf32> to vector<16x128xf32>
      %79 = arith.mulf %77, %78 : vector<16x128xf32>
      %80 = arith.truncf %60 : vector<16x128xf32> to vector<16x128xbf16>
      %cst_41 = arith.constant dense<0.000000e+00> : vector<16x128xf32>
      %81 = tpu.matmul %80, %69, %cst_41 {dimension_numbers = #tpu.dot_dimension_numbers<[1], [0], [0], [1], [0, 0, 1, 1], [], []>} : vector<16x128xbf16>, vector<128x128xbf16>, vector<16x128xf32> -> vector<16x128xf32>
      %82 = arith.truncf %75 : vector<16x128xf32> to vector<16x128xbf16>
      %cst_42 = arith.constant dense<0.000000e+00> : vector<16x128xf32>
      %83 = tpu.matmul %82, %71, %cst_42 {dimension_numbers = #tpu.dot_dimension_numbers<[1], [0], [0], [1], [0, 0, 1, 1], [], []>} : vector<16x128xbf16>, vector<128x128xbf16>, vector<16x128xf32> -> vector<16x128xf32>
      %84 = arith.addf %81, %83 : vector<16x128xf32>
      %cst_43 = arith.constant 0.000000e+00 : f32
      %85 = vector.broadcast %cst_43 : f32 to vector<16x128xf32>
      %86 = arith.maximumf %84, %85 : vector<16x128xf32>
      %87 = arith.truncf %67 : vector<16x128xf32> to vector<16x128xbf16>
      %cst_44 = arith.constant dense<0.000000e+00> : vector<16x128xf32>
      %88 = tpu.matmul %87, %69, %cst_44 {dimension_numbers = #tpu.dot_dimension_numbers<[1], [0], [0], [1], [0, 0, 1, 1], [], []>} : vector<16x128xbf16>, vector<128x128xbf16>, vector<16x128xf32> -> vector<16x128xf32>
      %89 = arith.truncf %79 : vector<16x128xf32> to vector<16x128xbf16>
      %cst_45 = arith.constant dense<0.000000e+00> : vector<16x128xf32>
      %90 = tpu.matmul %89, %71, %cst_45 {dimension_numbers = #tpu.dot_dimension_numbers<[1], [0], [0], [1], [0, 0, 1, 1], [], []>} : vector<16x128xbf16>, vector<128x128xbf16>, vector<16x128xf32> -> vector<16x128xf32>
      %91 = arith.addf %88, %90 : vector<16x128xf32>
      %cst_46 = arith.constant 0.000000e+00 : f32
      %92 = vector.broadcast %cst_46 : f32 to vector<16x128xf32>
      %93 = arith.maximumf %91, %92 : vector<16x128xf32>
      %94 = arith.truncf %86 : vector<16x128xf32> to vector<16x128xbf16>
      %c0_47 = arith.constant 0 : index
      %c0_48 = arith.constant 0 : index
      %95 = vector.load %arg9[%c0_47, %c0_48] : memref<128x128xbf16, #tpu.memory_space<vmem>>, vector<128x128xbf16>
      %cst_49 = arith.constant dense<0.000000e+00> : vector<16x128xf32>
      %96 = tpu.matmul %94, %95, %cst_49 {dimension_numbers = #tpu.dot_dimension_numbers<[1], [0], [0], [1], [0, 0, 1, 1], [], []>} : vector<16x128xbf16>, vector<128x128xbf16>, vector<16x128xf32> -> vector<16x128xf32>
      %97 = arith.truncf %93 : vector<16x128xf32> to vector<16x128xbf16>
      %c0_50 = arith.constant 0 : index
      %c0_51 = arith.constant 0 : index
      %98 = vector.load %arg10[%c0_50, %c0_51] : memref<128x128xbf16, #tpu.memory_space<vmem>>, vector<128x128xbf16>
      %cst_52 = arith.constant dense<0.000000e+00> : vector<16x128xf32>
      %99 = tpu.matmul %97, %98, %cst_52 {dimension_numbers = #tpu.dot_dimension_numbers<[1], [0], [0], [1], [0, 0, 1, 1], [], []>} : vector<16x128xbf16>, vector<128x128xbf16>, vector<16x128xf32> -> vector<16x128xf32>
      %100 = arith.addf %96, %99 : vector<16x128xf32>
      %c0_53 = arith.constant 0 : index
      %c0_54 = arith.constant 0 : index
      %101 = vector.load %arg11[%c0_53, %c0_54] : memref<1x128xf32, #tpu.memory_space<vmem>>, vector<1x128xf32>
      %102 = vector.broadcast %101 : vector<1x128xf32> to vector<16x128xf32>
      %103 = arith.addf %100, %102 : vector<16x128xf32>
      %c0_55 = arith.constant 0 : index
      %c0_56 = arith.constant 0 : index
      %104 = vector.load %arg13[%c0_55, %c0_56] : memref<16x128xf32, #tpu.memory_space<vmem>>, vector<16x128xf32>
      tpu.vector_store %arg13[%c0_55, %c0_56], %103 {strides = array<i32>} : memref<16x128xf32, #tpu.memory_space<vmem>>, vector<16x128xf32>,
      %c0_57 = arith.constant 0 : index
      %105 = memref.load %arg1[%c0_57] : memref<3xi32, #tpu.memory_space<smem>>
      %c1_58 = arith.constant 1 : index
      %106 = memref.load %arg1[%c1_58] : memref<3xi32, #tpu.memory_space<smem>>
      %107 = vector.broadcast %105 : i32 to vector<16x1xi32>
      %108 = arith.cmpi sge, %0, %107 : vector<16x1xi32>
      %109 = vector.broadcast %106 : i32 to vector<16x1xi32>
      %110 = arith.cmpi slt, %0, %109 : vector<16x1xi32>
      %111 = arith.andi %108, %110 : vector<16x1xi1>
      %cst_59 = arith.constant 0xFF800000 : f32
      %112 = vector.shape_cast %111 : vector<16x1xi1> to vector<16x1xi1>
      %113 = vector.broadcast %112 : vector<16x1xi1> to vector<16x128xi1>
      %114 = vector.broadcast %cst_59 : f32 to vector<16x128xf32>
      %115 = arith.select %113, %103, %114 : vector<16x128xi1>, vector<16x128xf32>
      %cst_60 = arith.constant dense<0xFF800000> : vector<128xf32>
      %116 = vector.multi_reduction <maximumf>, %115, %cst_60 [0] : vector<16x128xf32> to vector<128xf32>
      %117 = vector.shape_cast %116 : vector<128xf32> to vector<1x128xf32>
      %c1_61 = arith.constant 1 : index
      %118 = memref.load %arg1[%c1_61] : memref<3xi32, #tpu.memory_space<smem>>
      %c2 = arith.constant 2 : index
      %119 = memref.load %arg1[%c2] : memref<3xi32, #tpu.memory_space<smem>>
      %120 = vector.broadcast %118 : i32 to vector<16x1xi32>
      %121 = arith.cmpi sge, %0, %120 : vector<16x1xi32>
      %122 = vector.broadcast %119 : i32 to vector<16x1xi32>
      %123 = arith.cmpi slt, %0, %122 : vector<16x1xi32>
      %124 = arith.andi %121, %123 : vector<16x1xi1>
      %cst_62 = arith.constant 0xFF800000 : f32
      %125 = vector.shape_cast %124 : vector<16x1xi1> to vector<16x1xi1>
      %126 = vector.broadcast %125 : vector<16x1xi1> to vector<16x128xi1>
      %127 = vector.broadcast %cst_62 : f32 to vector<16x128xf32>
      %128 = arith.select %126, %103, %127 : vector<16x128xi1>, vector<16x128xf32>
      %cst_63 = arith.constant dense<0xFF800000> : vector<128xf32>
      %129 = vector.multi_reduction <maximumf>, %128, %cst_63 [0] : vector<16x128xf32> to vector<128xf32>
      %130 = vector.shape_cast %129 : vector<128xf32> to vector<1x128xf32>
      %131 = tpu.concatenate %117, %130 in 0 : vector<1x128xf32>, vector<1x128xf32> -> vector<2x128xf32>
      %c0_64 = arith.constant 0 : index
      %c0_65 = arith.constant 0 : index
      %132 = vector.load %arg12[%c0_64, %c0_65] : memref<2x128xf32, #tpu.memory_space<vmem>>, vector<2x128xf32>
      tpu.vector_store %arg12[%c0_64, %c0_65], %131 {strides = array<i32>} : memref<2x128xf32, #tpu.memory_space<vmem>>, vector<2x128xf32>,
    } else {
    }
    return
  }
  func.func @transform_0(%arg0: i32, %arg1: memref<3xi32, #tpu.memory_space<smem>>) -> (i32, i32) {
    %c0_i32 = arith.constant 0 : i32
    %c0_i32_0 = arith.constant 0 : i32
    return %c0_i32, %arg0 : i32, i32
  }
  func.func @transform_1(%arg0: i32, %arg1: memref<3xi32, #tpu.memory_space<smem>>) -> (i32, i32) {
    %c0_i32 = arith.constant 0 : i32
    %c0_i32_0 = arith.constant 0 : i32
    return %c0_i32, %arg0 : i32, i32
  }
  func.func @transform_2(%arg0: i32, %arg1: memref<3xi32, #tpu.memory_space<smem>>) -> (i32, i32) {
    %c0_i32 = arith.constant 0 : i32
    %c0_i32_0 = arith.constant 0 : i32
    return %c0_i32, %arg0 : i32, i32
  }
  func.func @transform_3(%arg0: i32, %arg1: memref<3xi32, #tpu.memory_space<smem>>) -> (i32, i32) {
    %c0_i32 = arith.constant 0 : i32
    %c0_i32_0 = arith.constant 0 : i32
    return %c0_i32, %arg0 : i32, i32
  }
  func.func @transform_4(%arg0: i32, %arg1: memref<3xi32, #tpu.memory_space<smem>>) -> (i32, i32) {
    %c0_i32 = arith.constant 0 : i32
    %c0_i32_0 = arith.constant 0 : i32
    %c0_i32_1 = arith.constant 0 : i32
    return %c0_i32, %c0_i32_0 : i32, i32
  }
  func.func @transform_5(%arg0: i32, %arg1: memref<3xi32, #tpu.memory_space<smem>>) -> (i32, i32, i32) {
    %c0_i32 = arith.constant 0 : i32
    %c0_i32_0 = arith.constant 0 : i32
    %c0_i32_1 = arith.constant 0 : i32
    %c0_i32_2 = arith.constant 0 : i32
    return %c0_i32, %c0_i32_0, %c0_i32_1 : i32, i32, i32
  }
  func.func @transform_6(%arg0: i32, %arg1: memref<3xi32, #tpu.memory_space<smem>>) -> (i32, i32, i32) {
    %c0_i32 = arith.constant 0 : i32
    %c0_i32_0 = arith.constant 0 : i32
    %c0_i32_1 = arith.constant 0 : i32
    %c0_i32_2 = arith.constant 0 : i32
    return %c0_i32, %c0_i32_0, %c0_i32_1 : i32, i32, i32
  }
  func.func @transform_7(%arg0: i32, %arg1: memref<3xi32, #tpu.memory_space<smem>>) -> (i32, i32) {
    %c0_i32 = arith.constant 0 : i32
    %c0_i32_0 = arith.constant 0 : i32
    %c0_i32_1 = arith.constant 0 : i32
    return %c0_i32, %c0_i32_0 : i32, i32
  }
  func.func @transform_8(%arg0: i32, %arg1: memref<3xi32, #tpu.memory_space<smem>>) -> (i32, i32) {
    %c0_i32 = arith.constant 0 : i32
    %c0_i32_0 = arith.constant 0 : i32
    %c0_i32_1 = arith.constant 0 : i32
    return %c0_i32, %c0_i32_0 : i32, i32
  }
  func.func @transform_9(%arg0: i32, %arg1: memref<3xi32, #tpu.memory_space<smem>>) -> (i32, i32) {
    %c0_i32 = arith.constant 0 : i32
    %c0_i32_0 = arith.constant 0 : i32
    %c0_i32_1 = arith.constant 0 : i32
    return %c0_i32, %c0_i32_0 : i32, i32
  }
  func.func @transform_10(%arg0: i32, %arg1: memref<3xi32, #tpu.memory_space<smem>>) -> (i32, i32) {
    %c0_i32 = arith.constant 0 : i32
    %c0_i32_0 = arith.constant 0 : i32
    %c0_i32_1 = arith.constant 0 : i32
    return %c0_i32, %c0_i32_0 : i32, i32
  }
  func.func @transform_11(%arg0: i32, %arg1: memref<3xi32, #tpu.memory_space<smem>>) -> (i32, i32) {
    %c0_i32 = arith.constant 0 : i32
    %c0_i32_0 = arith.constant 0 : i32
    %c0_i32_1 = arith.constant 0 : i32
    return %c0_i32, %c0_i32_0 : i32, i32
  }
}

</mosaic_0001>

<bundles_post_ra>
// kernel: tpu_custom_call.1
= control target key start
LH: loop header
LB: loop body
LE: loop exit
PB: predicated region body
PF: predicated region fallthrough
CT: control target
= control target key end

     0   :  { %s2024_s19 = smov [#allocation4]   ;;  %s2415_s0 = inlined_call_operand.hbm [shape: s32[3], index: 0, kind: input, shape index: {}]   ;;  %s2416_s1 = inlined_call_operand.hbm [shape: s32[1,256], index: 1, kind: input, shape index: {}]   ;;  %s2417_s2 = inlined_call_operand.vmem [shape: s32[1,256], index: 2, kind: input, shape index: {}]   ;;  %s2418_s3 = inlined_call_operand.vmem [shape: s32[1,256], index: 3, kind: input, shape index: {}]   ;;  %s2419_s4 = inlined_call_operand.vmem [shape: s32[1,256], index: 4, kind: input, shape index: {}]   ;;  %s2420_s5 = inlined_call_operand.hbm [shape: f32[16,128], index: 5, kind: input, shape index: {}]   ;;  %s2421_s6 = inlined_call_operand.hbm [shape: bf16[2,128,128], index: 6, kind: input, shape index: {}]   ;;  %s2422_s7 = inlined_call_operand.hbm [shape: bf16[2,128,128], index: 7, kind: input, shape index: {}]   ;;  %s2423_s8 = inlined_call_operand.hbm [shape: bf16[128,128], index: 8, kind: input, shape index: {}]   ;;  %s2424_s9 = inlined_call_operand.hbm [shape: bf16[128,128], index: 9, kind: input, shape index: {}]   ;;  %s2425_s10 = inlined_call_operand.vmem [shape: f32[1,128], index: 10, kind: input, shape index: {}]   ;;  %s2426_s11 = inlined_call_operand.hbm [shape: f32[2,128], index: 11, kind: output, shape index: {0}]   ;;  %s2427_s12 = inlined_call_operand.hbm [shape: f32[16,128], index: 12, kind: output, shape index: {1}]  }
   0x1   :  { %19 = dma.hbm_to_smem %s2415_s0, 16, %s2024_s19, [#allocation3] }
   0x2   :  { %2010 = dma.done.wait [#allocation3], 16 }
   0x3   :  { %2011 = vsyncadd [#allocation3], 4294967280 }
   0x4   :  { %21 = sfence }
   0x5   :  { %22 = vsyncpa [#allocation6], 0 }
   0x6   :  { %23 = vsyncpa [#allocation9], 0 }
   0x7   :  { %24 = vsyncpa [#allocation12], 0 }
   0x8   :  { %25 = vsyncpa [#allocation15], 0 }
   0x9   :  { %26 = vsyncpa [#allocation7], 0 }
   0xa   :  { %27 = vsyncpa [#allocation18], 0  ;;  %s2025_s22 = smov [#allocation8]  }
   0xb   :  { %s49_s23 = sshll.u32 %s2025_s22, 4  ;;  %s50_s23 = int_to_ptr.vmem [resolvable:$true] %s49_s23 }
   0xc   :  { %s1858_s24 = scalar_lea.vmem %s50_s23, 256  ;;  %p1863_p1 = scmp.lt.s32.totalorder %s50_s23, %s50_s23 }
   0xd   :  { %p1859_p0 = scmp.ne.s32.totalorder %s50_s23, %s1858_s24  ;;  %p1864_p2 = scmp.lt.s32.totalorder %s1858_s24, %s1858_s24 }
   0xf   :  { %p1865_p3 = por %p1864_p2, %p1863_p1 }
  0x11   :  { %p1866_p4 = pnand %p1865_p3, %p1859_p0 }
  0x13   :  { %1869 = shalt.err (!%p1866_p4)
}
  0x14   :  { %s2026_s0 = smov 128   ;;  %s2027_s25 = smov 8  }
  0x15   :  { %55 = dma.hbm_to_vmem [thread:$0]  %s2420_s5, 256, %s50_s23, [#allocation9], %s2026_s0, %s2026_s0, %s2027_s25  }
  0x16   :  { %s2028_s28 = smov [#allocation11]   ;;  %s2029_s30 = smov [#allocation5]  }
  0x17   :  { %s73_s29 = sshll.u32 %s2028_s28, 4  ;;  %s34_s13 = sshll.u32 %s2029_s30, 4  ;;  %s74_s29 = int_to_ptr.vmem [resolvable:$true] %s73_s29  ;;  %s35_s13 = int_to_ptr.vmem [resolvable:$true] %s34_s13 }
  0x18   :  { %s1878_s14 = scalar_lea.vmem %s74_s29, 2048  ;;  %p1883_p6 = scmp.lt.s32.totalorder %s74_s29, %s74_s29 }
  0x19   :  { %p1879_p5 = scmp.ne.s32.totalorder %s74_s29, %s1878_s14  ;;  %p1884_p7 = scmp.lt.s32.totalorder %s1878_s14, %s1878_s14 }
  0x1b   :  { %p1885_p8 = por %p1884_p7, %p1883_p6 }
  0x1d   :  { %p1886_p9 = pnand %p1885_p8, %p1879_p5 }
  0x1f   :  { %1889 = shalt.err (!%p1886_p9)
}
  0x20   :  { %s2030_s15 = smov 64   ;;  %s2031_s3 = smov 4  }
  0x21   :  { %79 = dma.hbm_to_vmem [thread:$0]  %s2422_s7, 2048, %s74_s29, [#allocation12], %s2030_s15, %s2030_s15, %s2031_s3  }
  0x22   :  { %s1898_s5 = scalar_lea.vmem %s35_s13, 32  ;;  %p1903_p11 = scmp.lt.s32.totalorder %s35_s13, %s35_s13 }
  0x23   :  { %p1899_p10 = scmp.ne.s32.totalorder %s35_s13, %s1898_s5  ;;  %p1904_p12 = scmp.lt.s32.totalorder %s1898_s5, %s1898_s5 }
  0x25   :  { %p1905_p13 = por %p1904_p12, %p1903_p11 }
  0x27   :  { %p1906_p0 = pnand %p1905_p13, %p1899_p10 }
  0x29   :  { %1909 = shalt.err (!%p1906_p0)
}
  0x2a   :  { %37 = dma.hbm_to_vmem [thread:$0]  %s2416_s1, 32, %s35_s13, [#allocation6]  }
  0x2b   :  { %s2032_s19 = smov [#allocation10]   ;;  %s2033_s21 = smov [#allocation13]  }
  0x2c   :  { %s61_s20 = sshll.u32 %s2032_s19, 4  ;;  %s85_s22 = sshll.u32 %s2033_s21, 4  ;;  %s62_s20 = int_to_ptr.vmem [resolvable:$true] %s61_s20  ;;  %s86_s22 = int_to_ptr.vmem [resolvable:$true] %s85_s22 }
  0x2d   :  { %s1918_s23 = scalar_lea.vmem %s62_s20, 2048  ;;  %p1923_p2 = scmp.lt.s32.totalorder %s62_s20, %s62_s20 }
  0x2e   :  { %p1919_p1 = scmp.ne.s32.totalorder %s62_s20, %s1918_s23  ;;  %p1924_p3 = scmp.lt.s32.totalorder %s1918_s23, %s1918_s23 }
  0x30   :  { %p1925_p4 = por %p1924_p3, %p1923_p2 }
  0x32   :  { %p1926_p5 = pnand %p1925_p4, %p1919_p1 }
  0x34   :  { %1929 = shalt.err (!%p1926_p5)
}
  0x35   :  { %67 = dma.hbm_to_vmem [thread:$0]  %s2421_s6, 2048, %s62_s20, [#allocation9], %s2030_s15, %s2030_s15, %s2031_s3  }
  0x36   :  { %s1938_s1 = scalar_lea.vmem %s86_s22, 1024  ;;  %p1943_p7 = scmp.lt.s32.totalorder %s86_s22, %s86_s22 }
  0x37   :  { %p1939_p6 = scmp.ne.s32.totalorder %s86_s22, %s1938_s1  ;;  %p1944_p8 = scmp.lt.s32.totalorder %s1938_s1, %s1938_s1 }
  0x39   :  { %p1945_p9 = por %p1944_p8, %p1943_p7 }
  0x3b   :  { %p1946_p10 = pnand %p1945_p9, %p1939_p6 }
  0x3d   :  { %1949 = shalt.err (!%p1946_p10)
}
  0x3e   :  { %91 = dma.hbm_to_vmem [thread:$0]  %s2423_s8, 1024, %s86_s22, [#allocation12], %s2030_s15, %s2030_s15, %s2031_s3  }
  0x3f   :  { %s2034_s28 = smov [#allocation14]  }
  0x40   :  { %s97_s29 = sshll.u32 %s2034_s28, 4  ;;  %s98_s29 = int_to_ptr.vmem [resolvable:$true] %s97_s29 }
  0x41   :  { %s1958_s30 = scalar_lea.vmem %s98_s29, 1024  ;;  %p1963_p12 = scmp.lt.s32.totalorder %s98_s29, %s98_s29 }
  0x42   :  { %p1959_p11 = scmp.ne.s32.totalorder %s98_s29, %s1958_s30  ;;  %p1964_p13 = scmp.lt.s32.totalorder %s1958_s30, %s1958_s30 }
  0x44   :  { %p1965_p0 = por %p1964_p13, %p1963_p12 }
  0x46   :  { %p1966_p1 = pnand %p1965_p0, %p1959_p11 }
  0x48   :  { %1969 = shalt.err (!%p1966_p1)
}
  0x49   :  { %103 = dma.hbm_to_vmem [thread:$0]  %s2424_s9, 1024, %s98_s29, [#allocation15], %s2030_s15, %s2030_s15, %s2031_s3  }
  0x4a   :  { %2012 = dma.done.wait [#allocation6], 32  }
  0x4b   :  { %2013 = vsyncadd [#allocation6], 4294967264 }
  0x4c   :  { %2014 = dma.done.wait [#allocation9], 2304  }
  0x4d   :  { %2015 = vsyncadd [#allocation9], 4294964992 }
  0x4e   :  { %2016 = dma.done.wait [#allocation12], 3072  }
  0x4f   :  { %2017 = vsyncadd [#allocation12], 4294964224 }
  0x50   :  { %2018 = dma.done.wait [#allocation15], 1024  }
  0x51   :  { %2019 = vsyncadd [#allocation15], 4294966272  ;;  %v125_v0 = vlaneseq  ;;  %vm132_vm0 = vcmask 130048   ;;  %v2035_v1 = vmov 0.0   ;;  %v158_v6 = vld [vmem:[%s2417_s2] sm:$0x3] }
  0x52   :  { %133 = vst.msk [vmem:[#allocation2] sm:$0xff] %vm132_vm0, %v2035_v1  ;;  %134 = vst.msk [vmem:[#allocation2 + $0x8] sm:$0xff] %vm132_vm0, %v2035_v1  ;;  %1546 = vmatprep.subr.bf16.mxu1 %v2035_v1  ;;  %v135_v7 = vld [vmem:[#allocation5] sm:$0x3]  ;;  %v2036_v12 = vmov 1.0|1.0  }
  0x53   :  { %v2146_v2 = vshrl.u32 %v125_v0, 7  ;;  %v292_v13 = vld [vmem:[#allocation8] sm:$0xff]  ;;  %v293_v14 = vld [vmem:[#allocation8 + $0x8] sm:$0xff]  ;;  %vm2037_vm13 = vmmov 0   ;;  %v2192_v31 = vld [vmem:[#allocation11 + $0x28] sm:$0xff]   ;;  %s1296_s2 = sld [smem:[#allocation4]] }
  0x54   :  { %v2165_v15 = vpack.c.bf16 %v293_v14, %v292_v13  ;;  %1548 = vmatprep.mubr.msk.bf16.mxu1 %vm2037_vm13, %v2035_v1  ;;  %v2185_v29 = vld [vmem:[#allocation11 + $0x38] sm:$0xff]   ;;  %v2188_v30 = vld [vmem:[#allocation11 + $0x30] sm:$0xff]   ;;  %v2196_v32 = vld [vmem:[#allocation11 + $0x20] sm:$0xff]   ;;  %s1446_s14 = sld [smem:[#allocation4 + $0x1]] }
  0x55   :  { %v142_v3 = vsub.s32 1, %v2146_v2  ;;  %v138_v4 = vsub.s32 0, %v2146_v2  ;;  %v2151_v5 = vadd.s32 8, %v2146_v2  ;;  %v2200_v33 = vld [vmem:[#allocation11 + $0x18] sm:$0xff]   ;;  %v2204_v34 = vld [vmem:[#allocation11 + $0x10] sm:$0xff]   ;;  %v2209_v35 = vld [vmem:[#allocation11 + $0x8] sm:$0xff]  }
  0x56   :  { %1547 = vmatpush3.bf16.msra.mxu1 %v2165_v15  ;;  %v2213_v36 = vld [vmem:[#allocation11] sm:$0xff]   ;;  %v1787_v40 = vld [vmem:[#allocation10 + $0x38] sm:$0xff]   ;;  %v1789_v43 = vld [vmem:[#allocation10 + $0x30] sm:$0xff]   ;;  %s1447_s15 = sld [smem:[#allocation4 + $0x2]] }
  0x57   :  { %v166_v8 = vrot.slane %v158_v6, %v142_v3  ;;  %v162_v9 = vrot.slane %v158_v6, %v138_v4  ;;  %v139_v10 = vrot.slane %v135_v7, %v138_v4  ;;  %v143_v11 = vrot.slane %v135_v7, %v142_v3  ;;  %1552 = vmatprep.subr.bf16.mxu1 %v2035_v1  ;;  %v1791_v44 = vld [vmem:[#allocation10 + $0x28] sm:$0xff]   ;;  %v1793_v45 = vld [vmem:[#allocation10 + $0x20] sm:$0xff]   ;;  %v1795_v46 = vld [vmem:[#allocation10 + $0x18] sm:$0xff]  }
  0x58   :  { %v1797_v47 = vld [vmem:[#allocation10 + $0x10] sm:$0xff]   ;;  %v1799_v48 = vld [vmem:[#allocation10 + $0x8] sm:$0xff]   ;;  %v1801_v49 = vld [vmem:[#allocation10] sm:$0xff]  }
  0x59   :  { %vm168_vm1 = vcmp.eq.s32.totalorder %v166_v8, %v2146_v2  ;;  %vm170_vm2 = vcmp.eq.s32.totalorder %v166_v8, %v2151_v5  ;;  %vm167_vm3 = vcmp.eq.s32.totalorder %v162_v9, %v2146_v2  ;;  %vm169_vm4 = vcmp.eq.s32.totalorder %v162_v9, %v2151_v5  ;;  %v181_v16 = vld [vmem:[#allocation2] sm:$0xff]  ;;  %v182_v20 = vld [vmem:[#allocation2 + $0x8] sm:$0xff] }
  0x5a   :  { %vm1385_vm5 = vmpackc.low %vm170_vm2, %vm168_vm1  ;;  %vm145_vm6 = vcmp.eq.s32.totalorder %v143_v11, %v2146_v2  ;;  %vm147_vm7 = vcmp.eq.s32.totalorder %v143_v11, %v2151_v5  ;;  %vm144_vm8 = vcmp.eq.s32.totalorder %v139_v10, %v2146_v2  ;;  %vm146_vm9 = vcmp.eq.s32.totalorder %v139_v10, %v2151_v5 }
  0x5b   :  { %1386 = vmatprep.subr.msk.bf16.mxu0 %vm1385_vm5, %v2036_v12  ;;  %vm1387_vm10 = vmpackc.low %vm169_vm4, %vm167_vm3 }
  0x5c   :  { %1388 = vmatpush1.bf16.xpose.msk.msra.mxu0 %vm1387_vm10, %v2036_v12  ;;  %vm1389_vm11 = vmpackc.low %vm147_vm7, %vm145_vm6 }
  0x5d   :  { %1390 = vmatprep.mubr.msk.bf16.mxu0 %vm1389_vm11, %v2036_v12  ;;  %vm1391_vm12 = vmpackc.low %vm146_vm9, %vm144_vm8  ;;  %1558 = vmatprep.subr.bf16.mxu0 %v2035_v1 }
  0x63   :  { %1392 = vmatmul.mubr.msk.bf16.vlgmr.msra.gmra.mxu0 %vm1391_vm12, %v2036_v12 }
  0x64   :  { %1574 = vmatprep.mubr.msk.bf16.mxu0 %vm2037_vm13, %v2035_v1  ;;  %1559 = vmatpush3.bf16.msra.mxu0 %v2185_v29 }
  0x65   :  { %1560 = vmatprep.subr.bf16.mxu0 %v2035_v1 }
  0x68   :  { %1561 = vmatpush3.bf16.msra.mxu0 %v2188_v30 }
  0x69   :  { %1562 = vmatprep.subr.bf16.mxu0 %v2035_v1 }
  0x6c   :  { %1563 = vmatpush3.bf16.msra.mxu0 %v2192_v31 }
  0x6d   :  { %1564 = vmatprep.subr.bf16.mxu0 %v2035_v1 }
  0x70   :  { %1565 = vmatpush3.bf16.msra.mxu0 %v2196_v32 }
  0x71   :  { %1566 = vmatprep.subr.bf16.mxu0 %v2035_v1 }
  0x74   :  { %1567 = vmatpush3.bf16.msra.mxu0 %v2200_v33 }
  0x75   :  { %1568 = vmatprep.subr.bf16.mxu0 %v2035_v1 }
  0x78   :  { %1569 = vmatpush3.bf16.msra.mxu0 %v2204_v34 }
  0x79   :  { %1570 = vmatprep.subr.bf16.mxu0 %v2035_v1 }
  0x7c   :  { %1571 = vmatpush3.bf16.msra.mxu0 %v2209_v35 }
  0x7d   :  { %1572 = vmatprep.subr.bf16.mxu0 %v2035_v1 }
  0x80   :  { %1573 = vmatpush3.bf16.msra.mxu0 %v2213_v36 }
  0x81   :  { %1598 = vmatprep.subr.bf16.mxu0 %v2035_v1 }
 0x123   :  { %v217_v17 = vpop.f32.mrf.mxu0 }
 0x124   :  { %v224_v18 = vadd.f32 %v217_v17, %v181_v16 }
 0x125   :  { %v219_v19 = vpop.f32.mrf.mxu0 }
 0x126   :  { %227 = vst.msk [vmem:[#allocation2] sm:$0xff] %vm132_vm0, %v224_v18 }
 0x127   :  { %v220_v21 = vpop.f32.mrf.mxu0 }
 0x128   :  { %v225_v22 = vadd.f32 %v220_v21, %v182_v20 }
 0x129   :  { %v222_v23 = vpop.f32.mrf.mxu0 }
 0x12a   :  { %228 = vst.msk [vmem:[#allocation2 + $0x8] sm:$0xff] %vm132_vm0, %v225_v22 }
 0x12d   :  { %v232_v24 = vld [vmem:[#allocation2] sm:$0xff] }
 0x12e   :  { %234 = vxpose.xlu0.b32.start [1/2] (short) (narrow) %v232_v24, 16  ;;  %v266_v25 = vsel %vm132_vm0, %v232_v24, 0.0 }
 0x12f   :  { %267 = vadd.xlane.f32.xlu1 %v266_v25 }
 0x131   :  { %v233_v26 = vld [vmem:[#allocation2 + $0x8] sm:$0xff] }
 0x132   :  { %235 = vxpose.xlu0.b32.end [2/2] (short) (narrow) %v233_v26, 16  ;;  %v2176_v27 = vpack.c.bf16 %v233_v26, %v232_v24  ;;  %v269_v28 = vsel %vm132_vm0, %v233_v26, 0.0 }
 0x133   :  { %270 = vadd.xlane.f32.xlu1 %v269_v28 }
 0x134   :  { %1549 = vmatmul.mubr.msk.bf16.vlgmr.msra.gmra.mxu1 %vm132_vm0, %v2176_v27 }
 0x135   :  { %1553 = vmatpush3.bf16.msra.mxu1 %v2165_v15  ;;  %1554 = vmatprep.mubr.msk.bf16.mxu1 %vm2037_vm13, %v2035_v1 }
 0x136   :  { %1578 = vmatprep.subr.bf16.mxu1 %v2035_v1 }
 0x1aa   :  { %v250_v37 = vpop.trf.xlu0 }
 0x1ab   :  { %v272_v38 = vsel %vm132_vm0, %v250_v37, 0.0 }
 0x1ac   :  { %273 = vadd.xlane.f32.xlu0 %v272_v38  ;;  %v2311_v38 = vld [vmem:[#allocation11 + $0x48] sm:$0xff]  }
 0x1ae   :  { %v251_v39 = vpop.trf.xlu0 }
 0x1af   :  { %v2218_v41 = vpack.c.bf16 %v251_v39, %v250_v37  ;;  %v275_v42 = vsel %vm132_vm0, %v251_v39, 0.0  ;;  %v2307_v37 = vld [vmem:[#allocation11 + $0x50] sm:$0xff]   ;;  %v2315_v39 = vld [vmem:[#allocation11 + $0x40] sm:$0xff]  }
 0x1b0   :  { %276 = vadd.xlane.f32.xlu1 %v275_v42 }
 0x1b1   :  { %1555 = vmatmul.mubr.msk.bf16.vlgmr.msra.gmra.mxu1 %vm132_vm0, %v2218_v41 }
 0x1b2   :  { %1579 = vmatpush3.bf16.msra.mxu1 %v1787_v40  ;;  %1594 = vmatprep.mubr.msk.bf16.mxu1 %vm2037_vm13, %v2035_v1 }
 0x1b3   :  { %1580 = vmatprep.subr.bf16.mxu1 %v2035_v1 }
 0x1b6   :  { %1581 = vmatpush3.bf16.msra.mxu1 %v1789_v43 }
 0x1b7   :  { %1582 = vmatprep.subr.bf16.mxu1 %v2035_v1 }
 0x1b8   :  { %v268_v50 = vpop.xlane.xlu1 %267 }
 0x1b9   :  { %v278_v52 = vmax.f32 %v268_v50, 1.0  ;;  %v1802_v50 = vld [vmem:[#allocation10 + $0x78] sm:$0xff]  }
 0x1ba   :  { %1583 = vmatpush3.bf16.msra.mxu1 %v1791_v44 }
 0x1bb   :  { %1584 = vmatprep.subr.bf16.mxu1 %v2035_v1  ;;  %1834 = vrcp.f32 %v278_v52  ;;  %v1804_v52 = vld [vmem:[#allocation10 + $0x68] sm:$0xff]  }
 0x1bc   :  { %v271_v51 = vpop.xlane.xlu1 %270 }
 0x1bd   :  { %v279_v53 = vmax.f32 %v271_v51, 1.0  ;;  %v1803_v51 = vld [vmem:[#allocation10 + $0x70] sm:$0xff]  }
 0x1be   :  { %1585 = vmatpush3.bf16.msra.mxu1 %v1793_v45 }
 0x1bf   :  { %1586 = vmatprep.subr.bf16.mxu1 %v2035_v1  ;;  %1836 = vrcp.f32 %v279_v53  ;;  %v1805_v53 = vld [vmem:[#allocation10 + $0x60] sm:$0xff]  }
 0x1c2   :  { %1587 = vmatpush3.bf16.msra.mxu1 %v1795_v46 }
 0x1c3   :  { %1588 = vmatprep.subr.bf16.mxu1 %v2035_v1 }
 0x1c6   :  { %1589 = vmatpush3.bf16.msra.mxu1 %v1797_v47 }
 0x1c7   :  { %1590 = vmatprep.subr.bf16.mxu1 %v2035_v1 }
 0x1c8   :  { %v2247_v56 = vpop.eup %1834 }
 0x1ca   :  { %1591 = vmatpush3.bf16.msra.mxu1 %v1799_v48 }
 0x1cb   :  { %1592 = vmatprep.subr.bf16.mxu1 %v2035_v1 }
 0x1cc   :  { %v2249_v57 = vpop.eup %1836 }
 0x1ce   :  { %1593 = vmatpush3.bf16.msra.mxu1 %v1801_v49 }
 0x1cf   :  { %1618 = vmatprep.subr.bf16.mxu1 %v2035_v1 }
 0x1d1   :  { %1595 = vmatmul.mubr.bf16.vlgmr.msra.gmra.mxu1 %v2165_v15 }
 0x1d2   :  { %1619 = vmatpush3.bf16.msra.mxu1 %v1787_v40  ;;  %1634 = vmatprep.mubr.msk.bf16.mxu1 %vm2037_vm13, %v2035_v1 }
 0x1d3   :  { %1620 = vmatprep.subr.bf16.mxu1 %v2035_v1 }
 0x1d6   :  { %1621 = vmatpush3.bf16.msra.mxu1 %v1789_v43 }
 0x1d7   :  { %1622 = vmatprep.subr.bf16.mxu1 %v2035_v1 }
 0x1da   :  { %1623 = vmatpush3.bf16.msra.mxu1 %v1791_v44 }
 0x1db   :  { %1624 = vmatprep.subr.bf16.mxu1 %v2035_v1 }
 0x1de   :  { %1625 = vmatpush3.bf16.msra.mxu1 %v1793_v45 }
 0x1df   :  { %1626 = vmatprep.subr.bf16.mxu1 %v2035_v1 }
 0x1e2   :  { %1627 = vmatpush3.bf16.msra.mxu1 %v1795_v46 }
 0x1e3   :  { %1628 = vmatprep.subr.bf16.mxu1 %v2035_v1 }
 0x1e6   :  { %1629 = vmatpush3.bf16.msra.mxu1 %v1797_v47 }
 0x1e7   :  { %1630 = vmatprep.subr.bf16.mxu1 %v2035_v1 }
 0x1ea   :  { %1631 = vmatpush3.bf16.msra.mxu1 %v1799_v48 }
 0x1eb   :  { %1632 = vmatprep.subr.bf16.mxu1 %v2035_v1 }
 0x1ee   :  { %1633 = vmatpush3.bf16.msra.mxu1 %v1801_v49 }
 0x1ef   :  { %1644 = vmatprep.subr.bf16.mxu1 %v2035_v1 }
 0x1f1   :  { %1635 = vmatmul.mubr.bf16.vlgmr.msra.gmra.mxu1 %v2165_v15 }
 0x1f2   :  { %1646 = vmatprep.mubr.msk.bf16.mxu1 %vm2037_vm13, %v2035_v1 }
 0x1f4   :  { %v364_v54 = vpop.f32.mrf.mxu1 }
 0x1f5   :  { %v371_v59 = vmul.f32 %v2247_v56, %v364_v54  ;;  %v1806_v54 = vld [vmem:[#allocation10 + $0x58] sm:$0xff]  }
 0x1f6   :  { %v1550_v55 = vpop.f32.mrf.mxu1 }
 0x1f7   :  { %v1808_v55 = vld [vmem:[#allocation10 + $0x48] sm:$0xff]  }
 0x1f8   :  { %v367_v58 = vpop.f32.mrf.mxu1 }
 0x1f9   :  { %v372_v60 = vmul.f32 %v2249_v57, %v367_v58  ;;  %v1809_v58 = vld [vmem:[#allocation10 + $0x40] sm:$0xff]  }
 0x1fa   :  { %v1551_v61 = vpop.f32.mrf.mxu1 }
 0x1fb   :  { %v419_v62 = vpack.c.bf16 %v372_v60, %v371_v59 }
 0x1fd   :  { %1575 = vmatmul.mubr.bf16.vlgmr.msra.gmra.mxu0 %v419_v62 }
 0x1fe   :  { %1599 = vmatpush3.bf16.msra.mxu0 %v2185_v29  ;;  %1614 = vmatprep.mubr.msk.bf16.mxu0 %vm2037_vm13, %v2035_v1 }
 0x1ff   :  { %1600 = vmatprep.subr.bf16.mxu0 %v2035_v1 }
 0x202   :  { %1601 = vmatpush3.bf16.msra.mxu0 %v2188_v30 }
 0x203   :  { %1602 = vmatprep.subr.bf16.mxu0 %v2035_v1 }
 0x206   :  { %1603 = vmatpush3.bf16.msra.mxu0 %v2192_v31 }
 0x207   :  { %1604 = vmatprep.subr.bf16.mxu0 %v2035_v1 }
 0x20a   :  { %1605 = vmatpush3.bf16.msra.mxu0 %v2196_v32 }
 0x20b   :  { %1606 = vmatprep.subr.bf16.mxu0 %v2035_v1 }
 0x20e   :  { %1607 = vmatpush3.bf16.msra.mxu0 %v2200_v33  ;;  %v2287_v33 = vld [vmem:[#allocation11 + $0x78] sm:$0xff]  }
 0x20f   :  { %1608 = vmatprep.subr.bf16.mxu0 %v2035_v1 }
 0x212   :  { %1609 = vmatpush3.bf16.msra.mxu0 %v2204_v34  ;;  %v2291_v34 = vld [vmem:[#allocation11 + $0x70] sm:$0xff]  }
 0x213   :  { %1610 = vmatprep.subr.bf16.mxu0 %v2035_v1 }
 0x216   :  { %1611 = vmatpush3.bf16.msra.mxu0 %v2209_v35  ;;  %v2295_v35 = vld [vmem:[#allocation11 + $0x68] sm:$0xff]  }
 0x217   :  { %1612 = vmatprep.subr.bf16.mxu0 %v2035_v1 }
 0x21a   :  { %1613 = vmatpush3.bf16.msra.mxu0 %v2213_v36  ;;  %v2303_v36 = vld [vmem:[#allocation11 + $0x58] sm:$0xff]  }
 0x21b   :  { %1638 = vmatprep.subr.bf16.mxu0 %v2035_v1 }
 0x235   :  { %v274_v63 = vpop.xlane.xlu0 %273 }
 0x236   :  { %v284_v3 = vmax.f32 %v274_v63, 1.0 }
 0x238   :  { %1838 = vrcp.f32 %v284_v3 }
 0x239   :  { %v277_v0 = vpop.xlane.xlu1 %276 }
 0x23a   :  { %v285_v4 = vmax.f32 %v277_v0, 1.0 }
 0x23c   :  { %1840 = vrcp.f32 %v285_v4  ;;  %v1820_v4 = vld [vmem:[#allocation13 + $0x28] sm:$0xff]  }
 0x245   :  { %v2271_v8 = vpop.eup %1838 }
 0x249   :  { %v2273_v9 = vpop.eup %1840 }
 0x271   :  { %v410_v6 = vpop.f32.mrf.mxu1 }
 0x272   :  { %v417_v11 = vmul.f32 %v2271_v8, %v410_v6  ;;  %v1821_v6 = vld [vmem:[#allocation13 + $0x20] sm:$0xff]  }
 0x273   :  { %v1556_v7 = vpop.f32.mrf.mxu1 }
 0x274   :  { %v1822_v7 = vld [vmem:[#allocation13 + $0x18] sm:$0xff]  }
 0x275   :  { %v413_v10 = vpop.f32.mrf.mxu1 }
 0x276   :  { %v418_v12 = vmul.f32 %v2273_v9, %v413_v10  ;;  %v1823_v10 = vld [vmem:[#allocation13 + $0x10] sm:$0xff]  }
 0x277   :  { %v1557_v13 = vpop.f32.mrf.mxu1 }
 0x278   :  { %v600_v14 = vpack.c.bf16 %v418_v12, %v417_v11  ;;  %v1824_v11 = vld [vmem:[#allocation13 + $0x8] sm:$0xff]   ;;  %v1825_v12 = vld [vmem:[#allocation13] sm:$0xff]  }
 0x27a   :  { %1615 = vmatmul.mubr.bf16.vlgmr.msra.gmra.mxu0 %v600_v14 }
 0x27b   :  { %1640 = vmatprep.mubr.msk.bf16.mxu0 %vm2037_vm13, %v2035_v1 }
 0x291   :  { %v591_v15 = vpop.f32.mrf.mxu1 }
 0x293   :  { %v1596_v16 = vpop.f32.mrf.mxu1 }
 0x295   :  { %v594_v17 = vpop.f32.mrf.mxu1 }
 0x297   :  { %v1597_v18 = vpop.f32.mrf.mxu1 }
 0x2b1   :  { %v676_v19 = vpop.f32.mrf.mxu1 }
 0x2b3   :  { %v1636_v20 = vpop.f32.mrf.mxu1 }
 0x2b5   :  { %v679_v21 = vpop.f32.mrf.mxu1 }
 0x2b7   :  { %v1637_v22 = vpop.f32.mrf.mxu1 }
 0x2b8   :  { %v1828_v22 = vld [vmem:[#allocation14 + $0x28] sm:$0xff]  }
 0x2bd   :  { %v502_v23 = vpop.f32.mrf.mxu0 }
 0x2be   :  { %v592_v25 = vadd.f32 %v591_v15, %v502_v23  ;;  %v1829_v23 = vld [vmem:[#allocation14 + $0x20] sm:$0xff]  }
 0x2bf   :  { %v1576_v24 = vpop.f32.mrf.mxu0 }
 0x2c0   :  { %v598_v30 = vmax.f32 %v592_v25, 0.0 }
 0x2c1   :  { %v505_v26 = vpop.f32.mrf.mxu0 }
 0x2c2   :  { %v595_v28 = vadd.f32 %v594_v17, %v505_v26 }
 0x2c3   :  { %v1577_v29 = vpop.f32.mrf.mxu0 }
 0x2c4   :  { %v599_v31 = vmax.f32 %v595_v28, 0.0 }
 0x2c6   :  { %v2279_v32 = vpack.c.bf16 %v599_v31, %v598_v30 }
 0x2c8   :  { %1639 = vmatpush3.bf16.msra.mxu0 %v2279_v32 }
 0x2c9   :  { %1650 = vmatprep.subr.bf16.mxu0 %v2035_v1 }
 0x2cb   :  { %1641 = vmatmul.mubr.msk.bf16.vlgmr.msra.gmra.mxu0 %vm132_vm0, %v2176_v27  ;;  %v2299_v27 = vld [vmem:[#allocation11 + $0x60] sm:$0xff]  }
 0x2cc   :  { %1666 = vmatprep.mubr.msk.bf16.mxu0 %vm2037_vm13, %v2035_v1  ;;  %1651 = vmatpush3.bf16.msra.mxu0 %v2287_v33 }
 0x2cd   :  { %1652 = vmatprep.subr.bf16.mxu0 %v2035_v1 }
 0x2d0   :  { %1653 = vmatpush3.bf16.msra.mxu0 %v2291_v34 }
 0x2d1   :  { %1654 = vmatprep.subr.bf16.mxu0 %v2035_v1 }
 0x2d4   :  { %1655 = vmatpush3.bf16.msra.mxu0 %v2295_v35 }
 0x2d5   :  { %1656 = vmatprep.subr.bf16.mxu0 %v2035_v1 }
 0x2d8   :  { %1657 = vmatpush3.bf16.msra.mxu0 %v2299_v27 }
 0x2d9   :  { %1658 = vmatprep.subr.bf16.mxu0 %v2035_v1 }
 0x2dc   :  { %1659 = vmatpush3.bf16.msra.mxu0 %v2303_v36 }
 0x2dd   :  { %1660 = vmatprep.subr.bf16.mxu0 %v2035_v1 }
 0x2e0   :  { %1661 = vmatpush3.bf16.msra.mxu0 %v2307_v37 }
 0x2e1   :  { %1662 = vmatprep.subr.bf16.mxu0 %v2035_v1 }
 0x2e4   :  { %1663 = vmatpush3.bf16.msra.mxu0 %v2311_v38 }
 0x2e5   :  { %1664 = vmatprep.subr.bf16.mxu0 %v2035_v1 }
 0x2e8   :  { %1665 = vmatpush3.bf16.msra.mxu0 %v2315_v39 }
 0x2e9   :  { %1690 = vmatprep.subr.bf16.mxu0 %v2035_v1 }
 0x33a   :  { %v635_v40 = vpop.f32.mrf.mxu0 }
 0x33b   :  { %v677_v43 = vadd.f32 %v676_v19, %v635_v40  ;;  %v1826_v19 = vld [vmem:[#allocation14 + $0x38] sm:$0xff]  }
 0x33c   :  { %v1616_v42 = vpop.f32.mrf.mxu0 }
 0x33d   :  { %v683_v47 = vmax.f32 %v677_v43, 0.0 }
 0x33e   :  { %v638_v44 = vpop.f32.mrf.mxu0 }
 0x33f   :  { %v680_v45 = vadd.f32 %v679_v21, %v638_v44  ;;  %v1827_v21 = vld [vmem:[#allocation14 + $0x30] sm:$0xff]  }
 0x340   :  { %v1617_v46 = vpop.f32.mrf.mxu0 }
 0x341   :  { %v684_v48 = vmax.f32 %v680_v45, 0.0 }
 0x343   :  { %v763_v49 = vpack.c.bf16 %v684_v48, %v683_v47 }
 0x345   :  { %1645 = vmatpush3.bf16.msra.mxu1 %v763_v49 }
 0x346   :  { %1670 = vmatprep.subr.bf16.mxu1 %v2035_v1 }
 0x348   :  { %1647 = vmatmul.mubr.msk.bf16.vlgmr.msra.gmra.mxu1 %vm132_vm0, %v2218_v41  ;;  %v1807_v41 = vld [vmem:[#allocation10 + $0x50] sm:$0xff]  }
 0x349   :  { %1671 = vmatpush3.bf16.msra.mxu1 %v1802_v50  ;;  %1686 = vmatprep.mubr.msk.bf16.mxu1 %vm2037_vm13, %v2035_v1 }
 0x34a   :  { %1672 = vmatprep.subr.bf16.mxu1 %v2035_v1 }
 0x34d   :  { %1673 = vmatpush3.bf16.msra.mxu1 %v1803_v51 }
 0x34e   :  { %1674 = vmatprep.subr.bf16.mxu1 %v2035_v1 }
 0x351   :  { %1675 = vmatpush3.bf16.msra.mxu1 %v1804_v52 }
 0x352   :  { %1676 = vmatprep.subr.bf16.mxu1 %v2035_v1 }
 0x355   :  { %1677 = vmatpush3.bf16.msra.mxu1 %v1805_v53 }
 0x356   :  { %1678 = vmatprep.subr.bf16.mxu1 %v2035_v1 }
 0x359   :  { %1679 = vmatpush3.bf16.msra.mxu1 %v1806_v54 }
 0x35a   :  { %1680 = vmatprep.subr.bf16.mxu1 %v2035_v1 }
 0x35d   :  { %1681 = vmatpush3.bf16.msra.mxu1 %v1807_v41 }
 0x35e   :  { %1682 = vmatprep.subr.bf16.mxu1 %v2035_v1 }
 0x361   :  { %1683 = vmatpush3.bf16.msra.mxu1 %v1808_v55 }
 0x362   :  { %1684 = vmatprep.subr.bf16.mxu1 %v2035_v1 }
 0x365   :  { %1685 = vmatpush3.bf16.msra.mxu1 %v1809_v58 }
 0x366   :  { %1710 = vmatprep.subr.bf16.mxu1 %v2035_v1 }
 0x368   :  { %1687 = vmatmul.mubr.bf16.vlgmr.msra.gmra.mxu1 %v2279_v32  ;;  %v1831_v32 = vld [vmem:[#allocation14 + $0x10] sm:$0xff]  }
 0x369   :  { %1711 = vmatpush3.bf16.msra.mxu1 %v1802_v50  ;;  %1726 = vmatprep.mubr.msk.bf16.mxu1 %vm2037_vm13, %v2035_v1 }
 0x36a   :  { %1712 = vmatprep.subr.bf16.mxu1 %v2035_v1 }
 0x36d   :  { %1713 = vmatpush3.bf16.msra.mxu1 %v1803_v51 }
 0x36e   :  { %1714 = vmatprep.subr.bf16.mxu1 %v2035_v1 }
 0x371   :  { %1715 = vmatpush3.bf16.msra.mxu1 %v1804_v52 }
 0x372   :  { %1716 = vmatprep.subr.bf16.mxu1 %v2035_v1 }
 0x375   :  { %1717 = vmatpush3.bf16.msra.mxu1 %v1805_v53 }
 0x376   :  { %1718 = vmatprep.subr.bf16.mxu1 %v2035_v1 }
 0x379   :  { %1719 = vmatpush3.bf16.msra.mxu1 %v1806_v54 }
 0x37a   :  { %1720 = vmatprep.subr.bf16.mxu1 %v2035_v1 }
 0x37d   :  { %1721 = vmatpush3.bf16.msra.mxu1 %v1807_v41 }
 0x37e   :  { %1722 = vmatprep.subr.bf16.mxu1 %v2035_v1 }
 0x381   :  { %1723 = vmatpush3.bf16.msra.mxu1 %v1808_v55  ;;  %v1298_v55 = vstv %s1296_s2 }
 0x382   :  { %1724 = vmatprep.subr.bf16.mxu1 %v2035_v1  ;;  %vm1299_vm14 = vcmp.ge.s32.totalorder %v2146_v2, %v1298_v55  ;;  %vm1300_vm2 = vcmp.ge.s32.totalorder %v2151_v5, %v1298_v55 }
 0x385   :  { %1725 = vmatpush3.bf16.msra.mxu1 %v1809_v58  ;;  %v1301_v58 = vstv %s1446_s14 }
 0x386   :  { %1750 = vmatprep.subr.bf16.mxu1 %v2035_v1  ;;  %vm1302_vm15 = vcmp.lt.s32.totalorder %v2146_v2, %v1301_v58  ;;  %vm1320_vm0 = vcmp.ge.s32.totalorder %v2146_v2, %v1301_v58  ;;  %vm1303_vm3 = vcmp.lt.s32.totalorder %v2151_v5, %v1301_v58  ;;  %vm1321_vm5 = vcmp.ge.s32.totalorder %v2151_v5, %v1301_v58 }
 0x387   :  { %vm2392_vm4 = vmand %vm1299_vm14, %vm1302_vm15 }
 0x388   :  { %1727 = vmatmul.mubr.bf16.vlgmr.msra.gmra.mxu1 %v763_v49  ;;  %vm1305_vm8 = vmand %vm1300_vm2, %vm1303_vm3 }
 0x389   :  { %1766 = vmatprep.mubr.msk.bf16.mxu1 %vm2037_vm13, %v2035_v1 }
 0x38b   :  { %v754_v59 = vpop.f32.mrf.mxu0 }
 0x38c   :  { %v761_v62 = vmul.f32 %v2247_v56, %v754_v59  ;;  %v1818_v56 = vld [vmem:[#allocation13 + $0x38] sm:$0xff]   ;;  %v1322_v59 = vstv %s1447_s15 }
 0x38d   :  { %v1642_v60 = vpop.f32.mrf.mxu0  ;;  %1751 = vmatpush3.bf16.msra.mxu1 %v1818_v56  ;;  %vm1323_vm1 = vcmp.lt.s32.totalorder %v2146_v2, %v1322_v59  ;;  %vm1324_vm6 = vcmp.lt.s32.totalorder %v2151_v5, %v1322_v59 }
 0x38e   :  { %1752 = vmatprep.subr.bf16.mxu1 %v2035_v1  ;;  %vm2398_vm7 = vmand %vm1320_vm0, %vm1323_vm1 }
 0x38f   :  { %v757_v61 = vpop.f32.mrf.mxu0  ;;  %vm1326_vm9 = vmand %vm1321_vm5, %vm1324_vm6 }
 0x390   :  { %v762_v63 = vmul.f32 %v2249_v57, %v757_v61  ;;  %v1819_v57 = vld [vmem:[#allocation13 + $0x30] sm:$0xff]   ;;  %v1445_v61 = vld [vmem:[%s2425_s10] ss:$0 sm:$0xff]  ;;  %s2038_s10 = smov [#allocation17]  }
 0x391   :  { %v1643_v0 = vpop.f32.mrf.mxu0  ;;  %1753 = vmatpush3.bf16.msra.mxu1 %v1819_v57  ;;  %s1358_s4 = sshll.u32 %s2038_s10, 4  ;;  %s1359_s4 = int_to_ptr.vmem [resolvable:$true] %s1358_s4 }
 0x392   :  { %v807_v3 = vpack.c.bf16 %v762_v63, %v761_v62  ;;  %1754 = vmatprep.subr.bf16.mxu1 %v2035_v1  ;;  %s1970_s5 = scalar_lea.vmem %s1359_s4, 256  ;;  %p1975_p3 = scmp.lt.s32.totalorder %s1359_s4, %s1359_s4 }
 0x393   :  { %p1971_p2 = scmp.ne.s32.totalorder %s1359_s4, %s1970_s5  ;;  %p1976_p4 = scmp.lt.s32.totalorder %s1970_s5, %s1970_s5 }
 0x394   :  { %1667 = vmatmul.mubr.bf16.vlgmr.msra.gmra.mxu0 %v807_v3 }
 0x395   :  { %1691 = vmatpush3.bf16.msra.mxu0 %v2287_v33  ;;  %1706 = vmatprep.mubr.msk.bf16.mxu0 %vm2037_vm13, %v2035_v1  ;;  %v1832_v33 = vld [vmem:[#allocation14 + $0x8] sm:$0xff]   ;;  %p1977_p5 = por %p1976_p4, %p1975_p3 }
 0x396   :  { %1692 = vmatprep.subr.bf16.mxu0 %v2035_v1  ;;  %1755 = vmatpush3.bf16.msra.mxu1 %v1820_v4 }
 0x397   :  { %1756 = vmatprep.subr.bf16.mxu1 %v2035_v1  ;;  %p1978_p6 = pnand %p1977_p5, %p1971_p2 }
 0x399   :  { %1693 = vmatpush3.bf16.msra.mxu0 %v2291_v34 }
 0x39a   :  { %1694 = vmatprep.subr.bf16.mxu0 %v2035_v1  ;;  %1757 = vmatpush3.bf16.msra.mxu1 %v1821_v6 }
 0x39b   :  { %1758 = vmatprep.subr.bf16.mxu1 %v2035_v1 }
 0x39d   :  { %1695 = vmatpush3.bf16.msra.mxu0 %v2295_v35 }
 0x39e   :  { %1696 = vmatprep.subr.bf16.mxu0 %v2035_v1  ;;  %1759 = vmatpush3.bf16.msra.mxu1 %v1822_v7 }
 0x39f   :  { %1760 = vmatprep.subr.bf16.mxu1 %v2035_v1 }
 0x3a1   :  { %1697 = vmatpush3.bf16.msra.mxu0 %v2299_v27 }
 0x3a2   :  { %1698 = vmatprep.subr.bf16.mxu0 %v2035_v1  ;;  %1761 = vmatpush3.bf16.msra.mxu1 %v1823_v10 }
 0x3a3   :  { %1762 = vmatprep.subr.bf16.mxu1 %v2035_v1 }
 0x3a5   :  { %1699 = vmatpush3.bf16.msra.mxu0 %v2303_v36  ;;  %v1833_v36 = vld [vmem:[#allocation14] sm:$0xff]  }
 0x3a6   :  { %1700 = vmatprep.subr.bf16.mxu0 %v2035_v1  ;;  %1763 = vmatpush3.bf16.msra.mxu1 %v1824_v11 }
 0x3a7   :  { %1764 = vmatprep.subr.bf16.mxu1 %v2035_v1 }
 0x3a9   :  { %1701 = vmatpush3.bf16.msra.mxu0 %v2307_v37 }
 0x3aa   :  { %1702 = vmatprep.subr.bf16.mxu0 %v2035_v1  ;;  %1765 = vmatpush3.bf16.msra.mxu1 %v1825_v12 }
 0x3ad   :  { %1703 = vmatpush3.bf16.msra.mxu0 %v2311_v38 }
 0x3ae   :  { %1704 = vmatprep.subr.bf16.mxu0 %v2035_v1 }
 0x3b1   :  { %1705 = vmatpush3.bf16.msra.mxu0 %v2315_v39 }
 0x3b2   :  { %1730 = vmatprep.subr.bf16.mxu0 %v2035_v1 }
 0x408   :  { %v798_v13 = vpop.f32.mrf.mxu1 }
 0x409   :  { %v805_v16 = vmul.f32 %v2271_v8, %v798_v13  ;;  %v1830_v8 = vld [vmem:[#allocation14 + $0x18] sm:$0xff]  }
 0x40a   :  { %v1648_v14 = vpop.f32.mrf.mxu1 }
 0x40c   :  { %v801_v15 = vpop.f32.mrf.mxu1 }
 0x40d   :  { %v806_v17 = vmul.f32 %v2273_v9, %v801_v15 }
 0x40e   :  { %v1649_v18 = vpop.f32.mrf.mxu1 }
 0x40f   :  { %v988_v20 = vpack.c.bf16 %v806_v17, %v805_v16 }
 0x411   :  { %1707 = vmatmul.mubr.bf16.vlgmr.msra.gmra.mxu0 %v988_v20 }
 0x412   :  { %1731 = vmatpush3.bf16.msra.mxu0 %v1826_v19  ;;  %1746 = vmatprep.mubr.msk.bf16.mxu0 %vm2037_vm13, %v2035_v1 }
 0x413   :  { %1732 = vmatprep.subr.bf16.mxu0 %v2035_v1 }
 0x416   :  { %1733 = vmatpush3.bf16.msra.mxu0 %v1827_v21 }
 0x417   :  { %1734 = vmatprep.subr.bf16.mxu0 %v2035_v1 }
 0x41a   :  { %1735 = vmatpush3.bf16.msra.mxu0 %v1828_v22 }
 0x41b   :  { %1736 = vmatprep.subr.bf16.mxu0 %v2035_v1 }
 0x41e   :  { %1737 = vmatpush3.bf16.msra.mxu0 %v1829_v23 }
 0x41f   :  { %1738 = vmatprep.subr.bf16.mxu0 %v2035_v1 }
 0x422   :  { %1739 = vmatpush3.bf16.msra.mxu0 %v1830_v8 }
 0x423   :  { %1740 = vmatprep.subr.bf16.mxu0 %v2035_v1 }
 0x426   :  { %1741 = vmatpush3.bf16.msra.mxu0 %v1831_v32 }
 0x427   :  { %1742 = vmatprep.subr.bf16.mxu0 %v2035_v1 }
 0x428   :  { %v979_v9 = vpop.f32.mrf.mxu1 }
 0x42a   :  { %v1688_v24 = vpop.f32.mrf.mxu1  ;;  %1743 = vmatpush3.bf16.msra.mxu0 %v1832_v33 }
 0x42b   :  { %1744 = vmatprep.subr.bf16.mxu0 %v2035_v1 }
 0x42c   :  { %v982_v25 = vpop.f32.mrf.mxu1 }
 0x42e   :  { %v1689_v26 = vpop.f32.mrf.mxu1  ;;  %1745 = vmatpush3.bf16.msra.mxu0 %v1833_v36 }
 0x448   :  { %v1064_v28 = vpop.f32.mrf.mxu1 }
 0x44a   :  { %v1728_v29 = vpop.f32.mrf.mxu1 }
 0x44c   :  { %v1067_v30 = vpop.f32.mrf.mxu1 }
 0x44e   :  { %v1729_v31 = vpop.f32.mrf.mxu1 }
 0x454   :  { %v890_v34 = vpop.f32.mrf.mxu0 }
 0x455   :  { %v980_v27 = vadd.f32 %v979_v9, %v890_v34 }
 0x456   :  { %v1668_v35 = vpop.f32.mrf.mxu0 }
 0x457   :  { %v986_v40 = vmax.f32 %v980_v27, 0.0 }
 0x458   :  { %v893_v37 = vpop.f32.mrf.mxu0 }
 0x459   :  { %v983_v38 = vadd.f32 %v982_v25, %v893_v37 }
 0x45a   :  { %v1669_v39 = vpop.f32.mrf.mxu0 }
 0x45b   :  { %v987_v42 = vmax.f32 %v983_v38, 0.0 }
 0x45d   :  { %v1073_v43 = vpack.c.bf16 %v987_v42, %v986_v40 }
 0x45f   :  { %1767 = vmatmul.mubr.bf16.vlgmr.msra.gmra.mxu1 %v1073_v43 }
 0x4d1   :  { %v1023_v44 = vpop.f32.mrf.mxu0 }
 0x4d2   :  { %v1065_v46 = vadd.f32 %v1064_v28, %v1023_v44 }
 0x4d3   :  { %v1708_v45 = vpop.f32.mrf.mxu0 }
 0x4d4   :  { %v1071_v50 = vmax.f32 %v1065_v46, 0.0 }
 0x4d5   :  { %v1026_v47 = vpop.f32.mrf.mxu0 }
 0x4d6   :  { %v1068_v48 = vadd.f32 %v1067_v30, %v1026_v47 }
 0x4d7   :  { %v1709_v49 = vpop.f32.mrf.mxu0 }
 0x4d8   :  { %v1072_v51 = vmax.f32 %v1068_v48, 0.0 }
 0x4da   :  { %v1090_v52 = vpack.c.bf16 %v1072_v51, %v1071_v50 }
 0x4dc   :  { %1747 = vmatmul.mubr.bf16.vlgmr.msra.gmra.mxu0 %v1090_v52 }
 0x51f   :  { %v1278_v1 = vpop.f32.mrf.mxu1 }
 0x521   :  { %v1768_v53 = vpop.f32.mrf.mxu1 }
 0x523   :  { %v1281_v54 = vpop.f32.mrf.mxu1 }
 0x525   :  { %v1769_v41 = vpop.f32.mrf.mxu1 }
 0x59c   :  { %v1189_v60 = vpop.f32.mrf.mxu0 }
 0x59d   :  { %v1279_v62 = vadd.f32 %v1278_v1, %v1189_v60 }
 0x59e   :  { %v1748_v63 = vpop.f32.mrf.mxu0 }
 0x59f   :  { %v1292_v0 = vadd.f32 %v1445_v61, %v1279_v62 }
 0x5a0   :  { %v1192_v57 = vpop.f32.mrf.mxu0 }
 0x5a1   :  { %1294 = vst [vmem:[#allocation17] sm:$0xff] %v1292_v0  ;;  %v1282_v2 = vadd.f32 %v1281_v54, %v1192_v57  ;;  %v1310_v7 = vsel %vm2392_vm4, %v1292_v0, -inf  ;;  %v1331_v5 = vsel %vm2398_vm7, %v1292_v0, -inf }
 0x5a2   :  { %v1749_v4 = vpop.f32.mrf.mxu0 }
 0x5a3   :  { %v1293_v6 = vadd.f32 %v1445_v61, %v1282_v2 }
 0x5a5   :  { %v1311_v10 = vsel %vm1305_vm8, %v1293_v6, -inf  ;;  %v1332_v11 = vsel %vm1326_vm9, %v1293_v6, -inf  ;;  %1295 = vst [vmem:[#allocation17 + $0x8] sm:$0xff] %v1293_v6 }
 0x5a6   :  { %v1312_v12 = vmax.f32 %v1310_v7, %v1311_v10  ;;  %v1333_v13 = vmax.f32 %v1331_v5, %v1332_v11 }
 0x5a7   :  { %1981 = shalt.err (!%p1978_p6)
}
 0x5a8   :  { %1364 = dma.vmem_to_hbm [thread:$0]  %s1359_s4, 256, %s2427_s12, [#allocation18], %s2026_s0, %s2026_s0, %s2027_s25   ;;  %v1313_v14 = vrot.slane %v1312_v12, 4  ;;  %v1334_v15 = vrot.slane %v1333_v13, 4  ;;  %vm1340_vm10 = vcmask 1040384  }
 0x5a9   :  { %s2039_s19 = smov [#allocation16]  }
 0x5aa   :  { %v1314_v16 = vmax.f32 %v1312_v12, %v1313_v14  ;;  %v1335_v17 = vmax.f32 %v1333_v13, %v1334_v15  ;;  %s1349_s20 = sshll.u32 %s2039_s19, 4  ;;  %s1350_s20 = int_to_ptr.vmem [resolvable:$true] %s1349_s20 }
 0x5ab   :  { %s1990_s21 = scalar_lea.vmem %s1350_s20, 32  ;;  %p1995_p8 = scmp.lt.s32.totalorder %s1350_s20, %s1350_s20 }
 0x5ac   :  { %v1315_v18 = vrot.slane %v1314_v16, 2  ;;  %v1336_v19 = vrot.slane %v1335_v17, 2  ;;  %p1991_p7 = scmp.ne.s32.totalorder %s1350_s20, %s1990_s21  ;;  %p1996_p9 = scmp.lt.s32.totalorder %s1990_s21, %s1990_s21 }
 0x5ae   :  { %v1316_v20 = vmax.f32 %v1314_v16, %v1315_v18  ;;  %v1337_v21 = vmax.f32 %v1335_v17, %v1336_v19  ;;  %p1997_p10 = por %p1996_p9, %p1995_p8 }
 0x5b0   :  { %v1317_v22 = vrot.slane %v1316_v20, 1  ;;  %v1338_v23 = vrot.slane %v1337_v21, 1  ;;  %p1998_p11 = pnand %p1997_p10, %p1991_p7 }
 0x5b2   :  { %v1318_v8 = vmax.f32 %v1316_v20, %v1317_v22  ;;  %v1339_v9 = vmax.f32 %v1337_v21, %v1338_v23 }
 0x5b4   :  { %v1341_v24 = vsel %vm1340_vm10, %v1318_v8, %v1339_v9 }
 0x5b5   :  { %1342 = vst [vmem:[#allocation16] sm:$0x3] %v1341_v24 }
 0x5b6   :  { %2001 = shalt.err (!%p1998_p11)
}
 0x5b7   :  { %1352 = dma.vmem_to_hbm [thread:$0]  %s1350_s20, 32, %s2426_s11, [#allocation7]  }
 0x5b8   :  { %2020 = dma.done.wait [#allocation7], 32  }
 0x5b9   :  { %2021 = vsyncadd [#allocation7], 4294967264 }
 0x5ba   :  { %2022 = dma.done.wait [#allocation18], 256  }
 0x5bb   :  { %2023 = vsyncadd [#allocation18], 4294967040 }
 0x5bc   :  { %1371 = vsyncpa [#allocation6], 1 }
 0x5bd   :  { %1372 = vsyncpa [#allocation9], 1 }
 0x5be   :  { %1373 = vsyncpa [#allocation12], 1 }
 0x5bf   :  { %1374 = vsyncpa [#allocation15], 1 }
 0x5c0   :  { %1375 = vsyncpa [#allocation7], 1 }
 0x5c1   :  { %1376 = vsyncpa [#allocation18], 1 }

</bundles_post_ra>
